<compile_context>
chip_gen: v7x
topology: tpu7x:2x2x1
jax: 0.10.0
libtpu: 0.0.40
codegen_flags: <defaults>
</compile_context>

<pallas_src>
import jax
import jax.numpy as jnp
from jax.experimental import pallas as pl
from jax.experimental.pallas import tpu as pltpu


def _critic_kernel(x_ref,
                   w1_ref, b1_ref,
                   w2_ref, b2_ref,
                   w3_ref, b3_ref,
                   w4_ref, b4_ref,
                   out_ref):
    x = x_ref[...].astype(jnp.float32)     # softmax math in f32
    xb = x_ref[...].astype(jnp.bfloat16)   # bf16 MXU operand

    # ---- MLP: q = L4(relu(L3(relu(L2(relu(L1(x))))))) --------------------
    # bf16 operands, f32 accumulation; bias add + relu in f32.
    h1 = jnp.dot(xb, w1_ref[...], preferred_element_type=jnp.float32) + b1_ref[...]
    h1 = jnp.maximum(h1, 0.0).astype(jnp.bfloat16)

    h2 = jnp.dot(h1, w2_ref[...], preferred_element_type=jnp.float32) + b2_ref[...]
    h2 = jnp.maximum(h2, 0.0).astype(jnp.bfloat16)

    h3 = jnp.dot(h2, w3_ref[...], preferred_element_type=jnp.float32) + b3_ref[...]
    h3 = jnp.maximum(h3, 0.0).astype(jnp.bfloat16)

    q = jnp.dot(h3, w4_ref[...], preferred_element_type=jnp.float32) + b4_ref[...]

    # ---- value = sum(softmax(x) * q, -1), softmax fused into the sum ------
    x_max = jnp.max(x, axis=-1, keepdims=True)
    ex = jnp.exp(x - x_max)                                   # [T, F] f32
    num = jnp.sum(ex * q, axis=-1, keepdims=True)             # [T, 1]
    den = jnp.sum(ex, axis=-1, keepdims=True)                 # [T, 1]
    val = num / den                                           # exact; mem-bound anyway

    # Lane-dense store: [T, 1] -> [1, T] (XLU relayout, essentially free).
    out_ref[...] = jnp.transpose(val)


def _pick_tile_b(b_pad, target_rows=2048):
    """Largest multiple of 128 dividing b_pad, <= target_rows, with >=2 blocks
    whenever b_pad allows it (v7x megacore; harmless on single-TC chips)."""
    m = b_pad // 128
    if m <= 1:
        return b_pad
    cap = max(1, min(target_rows // 128, m // 2))   # keep n_blocks >= 2
    best = 1
    for d in range(1, cap + 1):
        if m % d == 0:
            best = d
    return best * 128


def critic_forward(x, params, *, tile_b=None):
    """x: [B, input_feature]. Returns value: [B] float32."""
    B, F = x.shape
    (w1, b1), (w2, b2), (w3, b3), (w4, b4) = params
    assert w4.shape[1] == F, "output_projection must equal input_feature"

    # Minimal padding: only to a multiple of 128 (<=127 rows, often zero).
    b_pad = pl.cdiv(B, 128) * 128
    if tile_b is None:
        tile_b = _pick_tile_b(b_pad)
    assert tile_b % 128 == 0 and b_pad % tile_b == 0
    n_blocks = b_pad // tile_b
    if b_pad != B:
        # Zero rows -> uniform softmax, finite values, sliced off below.
        x = jnp.pad(x, ((0, b_pad - B), (0, 0)))

    # Cast weights to bf16 ONCE here (not per grid step); biases stay f32.
    w1b, w2b, w3b, w4b = (w.astype(jnp.bfloat16) for w in (w1, w2, w3, w4))

    h1d, h2d, h3d = w1.shape[1], w2.shape[1], w3.shape[1]
    x_item = x.dtype.itemsize

    # Advisory cost so XLA can overlap this call with surrounding PPO work.
    flops = 2 * b_pad * (F * h1d + h1d * h2d + h2d * h3d + h3d * F)
    param_bytes = (sum(w.size for w in (w1, w2, w3, w4)) * 2
                   + sum(b.size for b in (b1, b2, b3, b4)) * 4)
    bytes_accessed = b_pad * F * x_item + b_pad * 4 + param_bytes
    cost = pl.CostEstimate(flops=flops,
                           transcendentals=b_pad * F,
                           bytes_accessed=bytes_accessed)

    # Scoped-VMEM estimate: double-buffered x/out tiles + resident params +
    # f32/bf16 intermediates, with 2x headroom; covers v5e's 16 MiB default,
    # capped well inside v7x's 64 MiB physical VMEM.
    live_bytes = (2 * tile_b * F * x_item          # double-buffered x tile
                  + 2 * tile_b * 4                 # double-buffered out tile
                  + param_bytes
                  + tile_b * (12 * F + 2 * (h1d + h2d + h3d)))
    vmem_limit = int(min(max(2 * live_bytes, 16 * 1024 * 1024),
                         64 * 1024 * 1024))

    def resident(shape):
        # Constant block index -> DMA'd once, VMEM-resident across grid steps.
        return pl.BlockSpec(shape, lambda i: (0, 0))

    out = pl.pallas_call(
        _critic_kernel,
        out_shape=jax.ShapeDtypeStruct((1, b_pad), jnp.float32),
        grid=(n_blocks,),
        in_specs=[
            pl.BlockSpec((tile_b, F), lambda i: (i, 0)),   # x batch tile
            resident(w1b.shape), resident(b1.shape),
            resident(w2b.shape), resident(b2.shape),
            resident(w3b.shape), resident(b3.shape),
            resident(w4b.shape), resident(b4.shape),
        ],
        # Lane-dense output blocks: disjoint [1, tile_b] lane ranges per step.
        out_specs=pl.BlockSpec((1, tile_b), lambda i: (0, i)),
        compiler_params=pltpu.CompilerParams(
            dimension_semantics=("parallel",),             # megacore on v7x
            vmem_limit_bytes=vmem_limit),
        cost_estimate=cost,
    )(x, w1b, b1, w2b, b2, w3b, b3, w4b, b4)

    return out[0, :B]


def init_params(key, input_feature, h1, h2, h3, output_projection):
    """Deterministic synthetic params. Weights stored as [in, out], biases [1, out]."""
    dims = [(input_feature, h1), (h1, h2), (h2, h3), (h3, output_projection)]
    params = []
    for i, (din, dout) in enumerate(dims):
        kw, kb = jax.random.split(jax.random.fold_in(key, i))
        bound = 1.0 / jnp.sqrt(din)
        w = jax.random.uniform(kw, (din, dout), jnp.float32, -bound, bound)
        b = jax.random.uniform(kb, (1, dout), jnp.float32, -bound, bound)
        params.append((w, b))
    return params


def critic_reference(x, params):
    """Pure-JAX f32 reference mirroring the PyTorch forward."""
    (w1, b1), (w2, b2), (w3, b3), (w4, b4) = params
    x = x.astype(jnp.float32)
    h = jnp.maximum(x @ w1 + b1, 0.0)
    h = jnp.maximum(h @ w2 + b2, 0.0)
    h = jnp.maximum(h @ w3 + b3, 0.0)
    q = h @ w4 + b4
    pi = jax.nn.softmax(x, axis=-1)
    return jnp.sum(pi * q, axis=-1)


if __name__ == "__main__":
    # output_projection must equal input_feature (as used by the original
    # module) so that pi * q is well-defined elementwise.
    input_feature = 128
    hidden1, hidden2, hidden3 = 32, 32, 32
    output_projection = 128
    batch = 512   # 128-aligned -> no padding; auto tile picks 256 (2 blocks)

    key = jax.random.PRNGKey(0)
    k_x, k_p = jax.random.split(key)
    x = jax.random.normal(k_x, (batch, input_feature), jnp.float32)
    params = init_params(k_p, input_feature, hidden1, hidden2, hidden3,
                         output_projection)

    value = jax.block_until_ready(critic_forward(x, params))

    ref = critic_reference(x, params)
    assert value.shape == (batch,)
    # bf16 MXU operands (f32 accumulation) vs pure-f32 reference.
    max_err = float(jnp.max(jnp.abs(value - ref)))
    assert jnp.allclose(value, ref, atol=2e-2, rtol=2e-2), max_err

    print("KERNEL_OK")
</pallas_src>

<mosaic_0001>
module attributes {stable_mosaic.version = 11 : i64} {
  func.func @_critic_kernel(%arg0: i32, %arg1: memref<256x128xf32, #tpu.memory_space<vmem>>, %arg2: memref<128x32xbf16, #tpu.memory_space<vmem>>, %arg3: memref<1x32xf32, #tpu.memory_space<vmem>>, %arg4: memref<32x32xbf16, #tpu.memory_space<vmem>>, %arg5: memref<1x32xf32, #tpu.memory_space<vmem>>, %arg6: memref<32x32xbf16, #tpu.memory_space<vmem>>, %arg7: memref<1x32xf32, #tpu.memory_space<vmem>>, %arg8: memref<32x128xbf16, #tpu.memory_space<vmem>>, %arg9: memref<1x128xf32, #tpu.memory_space<vmem>>, %arg10: memref<1x256xf32, #tpu.memory_space<vmem>>) attributes {dimension_semantics = [#tpu.dimension_semantics<parallel>], iteration_bounds = array<i64: 2>, scalar_prefetch = 0 : i64, scratch_operands = 0 : i64, tpu.core_type = #tpu.core_type<tc>, window_params = [{transform_indices = @transform_0, window_bounds = array<i64: 256, 128>}, {pipeline_mode = #tpu.pipeline_mode<synchronous>, transform_indices = @transform_1, window_bounds = array<i64: 128, 32>}, {pipeline_mode = #tpu.pipeline_mode<synchronous>, transform_indices = @transform_2, window_bounds = array<i64: 1, 32>}, {pipeline_mode = #tpu.pipeline_mode<synchronous>, transform_indices = @transform_3, window_bounds = array<i64: 32, 32>}, {pipeline_mode = #tpu.pipeline_mode<synchronous>, transform_indices = @transform_4, window_bounds = array<i64: 1, 32>}, {pipeline_mode = #tpu.pipeline_mode<synchronous>, transform_indices = @transform_5, window_bounds = array<i64: 32, 32>}, {pipeline_mode = #tpu.pipeline_mode<synchronous>, transform_indices = @transform_6, window_bounds = array<i64: 1, 32>}, {pipeline_mode = #tpu.pipeline_mode<synchronous>, transform_indices = @transform_7, window_bounds = array<i64: 32, 128>}, {pipeline_mode = #tpu.pipeline_mode<synchronous>, transform_indices = @transform_8, window_bounds = array<i64: 1, 128>}, {transform_indices = @transform_9, window_bounds = array<i64: 1, 256>}]} {
    %c0 = arith.constant 0 : index
    %c0_0 = arith.constant 0 : index
    %0 = vector.load %arg1[%c0, %c0_0] : memref<256x128xf32, #tpu.memory_space<vmem>>, vector<256x128xf32>
    %c0_1 = arith.constant 0 : index
    %c0_2 = arith.constant 0 : index
    %1 = vector.load %arg1[%c0_1, %c0_2] : memref<256x128xf32, #tpu.memory_space<vmem>>, vector<256x128xf32>
    %2 = arith.truncf %1 : vector<256x128xf32> to vector<256x128xbf16>
    %c0_3 = arith.constant 0 : index
    %c0_4 = arith.constant 0 : index
    %3 = vector.load %arg2[%c0_3, %c0_4] : memref<128x32xbf16, #tpu.memory_space<vmem>>, vector<128x32xbf16>
    %cst = arith.constant dense<0.000000e+00> : vector<256x32xf32>
    %4 = tpu.matmul %2, %3, %cst {dimension_numbers = #tpu.dot_dimension_numbers<[1], [0], [0], [1], [0, 0, 1, 1], [], []>} : vector<256x128xbf16>, vector<128x32xbf16>, vector<256x32xf32> -> vector<256x32xf32>
    %c0_5 = arith.constant 0 : index
    %c0_6 = arith.constant 0 : index
    %5 = vector.load %arg3[%c0_5, %c0_6] : memref<1x32xf32, #tpu.memory_space<vmem>>, vector<1x32xf32>
    %6 = vector.broadcast %5 : vector<1x32xf32> to vector<256x32xf32>
    %7 = arith.addf %4, %6 : vector<256x32xf32>
    %cst_7 = arith.constant 0.000000e+00 : f32
    %8 = vector.broadcast %cst_7 : f32 to vector<256x32xf32>
    %9 = arith.maximumf %7, %8 : vector<256x32xf32>
    %10 = arith.truncf %9 : vector<256x32xf32> to vector<256x32xbf16>
    %c0_8 = arith.constant 0 : index
    %c0_9 = arith.constant 0 : index
    %11 = vector.load %arg4[%c0_8, %c0_9] : memref<32x32xbf16, #tpu.memory_space<vmem>>, vector<32x32xbf16>
    %cst_10 = arith.constant dense<0.000000e+00> : vector<256x32xf32>
    %12 = tpu.matmul %10, %11, %cst_10 {dimension_numbers = #tpu.dot_dimension_numbers<[1], [0], [0], [1], [0, 0, 1, 1], [], []>} : vector<256x32xbf16>, vector<32x32xbf16>, vector<256x32xf32> -> vector<256x32xf32>
    %c0_11 = arith.constant 0 : index
    %c0_12 = arith.constant 0 : index
    %13 = vector.load %arg5[%c0_11, %c0_12] : memref<1x32xf32, #tpu.memory_space<vmem>>, vector<1x32xf32>
    %14 = vector.broadcast %13 : vector<1x32xf32> to vector<256x32xf32>
    %15 = arith.addf %12, %14 : vector<256x32xf32>
    %cst_13 = arith.constant 0.000000e+00 : f32
    %16 = vector.broadcast %cst_13 : f32 to vector<256x32xf32>
    %17 = arith.maximumf %15, %16 : vector<256x32xf32>
    %18 = arith.truncf %17 : vector<256x32xf32> to vector<256x32xbf16>
    %c0_14 = arith.constant 0 : index
    %c0_15 = arith.constant 0 : index
    %19 = vector.load %arg6[%c0_14, %c0_15] : memref<32x32xbf16, #tpu.memory_space<vmem>>, vector<32x32xbf16>
    %cst_16 = arith.constant dense<0.000000e+00> : vector<256x32xf32>
    %20 = tpu.matmul %18, %19, %cst_16 {dimension_numbers = #tpu.dot_dimension_numbers<[1], [0], [0], [1], [0, 0, 1, 1], [], []>} : vector<256x32xbf16>, vector<32x32xbf16>, vector<256x32xf32> -> vector<256x32xf32>
    %c0_17 = arith.constant 0 : index
    %c0_18 = arith.constant 0 : index
    %21 = vector.load %arg7[%c0_17, %c0_18] : memref<1x32xf32, #tpu.memory_space<vmem>>, vector<1x32xf32>
    %22 = vector.broadcast %21 : vector<1x32xf32> to vector<256x32xf32>
    %23 = arith.addf %20, %22 : vector<256x32xf32>
    %cst_19 = arith.constant 0.000000e+00 : f32
    %24 = vector.broadcast %cst_19 : f32 to vector<256x32xf32>
    %25 = arith.maximumf %23, %24 : vector<256x32xf32>
    %26 = arith.truncf %25 : vector<256x32xf32> to vector<256x32xbf16>
    %c0_20 = arith.constant 0 : index
    %c0_21 = arith.constant 0 : index
    %27 = vector.load %arg8[%c0_20, %c0_21] : memref<32x128xbf16, #tpu.memory_space<vmem>>, vector<32x128xbf16>
    %cst_22 = arith.constant dense<0.000000e+00> : vector<256x128xf32>
    %28 = tpu.matmul %26, %27, %cst_22 {dimension_numbers = #tpu.dot_dimension_numbers<[1], [0], [0], [1], [0, 0, 1, 1], [], []>} : vector<256x32xbf16>, vector<32x128xbf16>, vector<256x128xf32> -> vector<256x128xf32>
    %c0_23 = arith.constant 0 : index
    %c0_24 = arith.constant 0 : index
    %29 = vector.load %arg9[%c0_23, %c0_24] : memref<1x128xf32, #tpu.memory_space<vmem>>, vector<1x128xf32>
    %30 = vector.broadcast %29 : vector<1x128xf32> to vector<256x128xf32>
    %31 = arith.addf %28, %30 : vector<256x128xf32>
    %cst_25 = arith.constant dense<0xFF800000> : vector<256xf32>
    %32 = vector.multi_reduction <maximumf>, %0, %cst_25 [1] : vector<256x128xf32> to vector<256xf32>
    %33 = vector.shape_cast %32 : vector<256xf32> to vector<256x1xf32>
    %34 = vector.broadcast %33 : vector<256x1xf32> to vector<256x128xf32>
    %35 = arith.subf %0, %34 : vector<256x128xf32>
    %36 = math.exp %35 : vector<256x128xf32>
    %37 = arith.mulf %36, %31 : vector<256x128xf32>
    %cst_26 = arith.constant dense<0.000000e+00> : vector<256xf32>
    %38 = vector.multi_reduction <add>, %37, %cst_26 [1] : vector<256x128xf32> to vector<256xf32>
    %39 = vector.shape_cast %38 : vector<256xf32> to vector<256x1xf32>
    %cst_27 = arith.constant dense<0.000000e+00> : vector<256xf32>
    %40 = vector.multi_reduction <add>, %36, %cst_27 [1] : vector<256x128xf32> to vector<256xf32>
    %41 = vector.shape_cast %40 : vector<256xf32> to vector<256x1xf32>
    %42 = arith.divf %39, %41 : vector<256x1xf32>
    %43 = tpu.transpose %42, [1, 0] : vector<256x1xf32> -> vector<1x256xf32>
    %c0_28 = arith.constant 0 : index
    %c0_29 = arith.constant 0 : index
    %44 = vector.load %arg10[%c0_28, %c0_29] : memref<1x256xf32, #tpu.memory_space<vmem>>, vector<1x256xf32>
    tpu.vector_store %arg10[%c0_28, %c0_29], %43 {strides = array<i32>} : memref<1x256xf32, #tpu.memory_space<vmem>>, vector<1x256xf32>,
    return
  }
  func.func @transform_0(%arg0: i32) -> (i32, i32) {
    %c0_i32 = arith.constant 0 : i32
    %c0_i32_0 = arith.constant 0 : i32
    return %arg0, %c0_i32 : i32, i32
  }
  func.func @transform_1(%arg0: i32) -> (i32, i32) {
    %c0_i32 = arith.constant 0 : i32
    %c0_i32_0 = arith.constant 0 : i32
    %c0_i32_1 = arith.constant 0 : i32
    return %c0_i32, %c0_i32_0 : i32, i32
  }
  func.func @transform_2(%arg0: i32) -> (i32, i32) {
    %c0_i32 = arith.constant 0 : i32
    %c0_i32_0 = arith.constant 0 : i32
    %c0_i32_1 = arith.constant 0 : i32
    return %c0_i32, %c0_i32_0 : i32, i32
  }
  func.func @transform_3(%arg0: i32) -> (i32, i32) {
    %c0_i32 = arith.constant 0 : i32
    %c0_i32_0 = arith.constant 0 : i32
    %c0_i32_1 = arith.constant 0 : i32
    return %c0_i32, %c0_i32_0 : i32, i32
  }
  func.func @transform_4(%arg0: i32) -> (i32, i32) {
    %c0_i32 = arith.constant 0 : i32
    %c0_i32_0 = arith.constant 0 : i32
    %c0_i32_1 = arith.constant 0 : i32
    return %c0_i32, %c0_i32_0 : i32, i32
  }
  func.func @transform_5(%arg0: i32) -> (i32, i32) {
    %c0_i32 = arith.constant 0 : i32
    %c0_i32_0 = arith.constant 0 : i32
    %c0_i32_1 = arith.constant 0 : i32
    return %c0_i32, %c0_i32_0 : i32, i32
  }
  func.func @transform_6(%arg0: i32) -> (i32, i32) {
    %c0_i32 = arith.constant 0 : i32
    %c0_i32_0 = arith.constant 0 : i32
    %c0_i32_1 = arith.constant 0 : i32
    return %c0_i32, %c0_i32_0 : i32, i32
  }
  func.func @transform_7(%arg0: i32) -> (i32, i32) {
    %c0_i32 = arith.constant 0 : i32
    %c0_i32_0 = arith.constant 0 : i32
    %c0_i32_1 = arith.constant 0 : i32
    return %c0_i32, %c0_i32_0 : i32, i32
  }
  func.func @transform_8(%arg0: i32) -> (i32, i32) {
    %c0_i32 = arith.constant 0 : i32
    %c0_i32_0 = arith.constant 0 : i32
    %c0_i32_1 = arith.constant 0 : i32
    return %c0_i32, %c0_i32_0 : i32, i32
  }
  func.func @transform_9(%arg0: i32) -> (i32, i32) {
    %c0_i32 = arith.constant 0 : i32
    %c0_i32_0 = arith.constant 0 : i32
    return %c0_i32, %arg0 : i32, i32
  }
}

</mosaic_0001>

<bundles_post_ra>
// kernel: tpu_custom_call.1
= control target key start
LH: loop header
LB: loop body
LE: loop exit
PB: predicated region body
PF: predicated region fallthrough
CT: control target
= control target key end

     0   :  { %14 = vsyncpa [#allocation3], 0  ;;  %s3485_s0 = inlined_call_operand.hbm [shape: f32[512,128], index: 0, kind: input, shape index: {}]   ;;  %s3486_s1 = inlined_call_operand.vmem [shape: bf16[128,32], index: 1, kind: input, shape index: {}]   ;;  %s3487_s2 = inlined_call_operand.vmem [shape: f32[1,32], index: 2, kind: input, shape index: {}]   ;;  %s3488_s3 = inlined_call_operand.vmem [shape: bf16[32,32], index: 3, kind: input, shape index: {}]   ;;  %s3489_s4 = inlined_call_operand.vmem [shape: f32[1,32], index: 4, kind: input, shape index: {}]   ;;  %s3490_s5 = inlined_call_operand.vmem [shape: bf16[32,32], index: 5, kind: input, shape index: {}]   ;;  %s3491_s6 = inlined_call_operand.vmem [shape: f32[1,32], index: 6, kind: input, shape index: {}]   ;;  %s3492_s7 = inlined_call_operand.vmem [shape: bf16[32,128], index: 7, kind: input, shape index: {}]   ;;  %s3493_s8 = inlined_call_operand.vmem [shape: f32[1,128], index: 8, kind: input, shape index: {}]   ;;  %s3494_s9 = inlined_call_operand.hbm [shape: f32[1,512], index: 9, kind: output, shape index: {}]  }
   0x1   :  { %16 = vsyncpa [#allocation3 + $0x1], 0 }
   0x2   :  { %17 = vsyncpa [#allocation4], 0 }
   0x3   :  { %19 = vsyncpa [#allocation4 + $0x1], 0  ;;  %s2697_s30 = smov 0   ;;  %s2699_s10 = smov 0  }
   0x4   :  { %s2701_s11 = smov 0   ;;  %s2703_s12 = smov 0  }
   0x5 LB: > { %s2718_s13 = sadd.s32 4294967295, %s2640_s12   ;;  %s2031_s14 = sadd.s32 4294967294, %s2640_s12   ;;  %s2640_s12 = sphi %s2703_s12, %s3507_s12   ;;  %s2636_s11 = sphi %s2701_s11, %s3506_s11   ;;  %s2632_s10 = sphi %s2699_s10, %s3505_s10   ;;  %s2628_s30 = sphi %s2697_s30, %s3504_s30  }
   0x6   : > { %s2722_s15 = sadd.s32 1, %s2640_s12   ;;  %s32_s16 = sadd.s32 1, %s2636_s11 }
   0x7   : > { %s29_s17 = ssub.s32 %s2640_s12, %s2722_s15  ;;  %p39_p0 = scmp.ne.s32.totalorder %s2636_s11, %s2632_s10 }
   0x8   : > { %p30_p1 = scmp.eq.s32.totalorder %s29_s17, 0  ;;  %p40_p2 = scmp.eq.s32.totalorder %s2640_s12, 0 }
   0x9   : > { %p45_p3 = scmp.ne.s32.totalorder %s2632_s10, %s2628_s30  ;;  %p46_p4 = scmp.eq.s32.totalorder %s2718_s13, 0 }
   0xa   : > { %s2734_s18 = scalar_select %p30_p1, %s2636_s11, %s32_s16  }
   0xb   : > { %p2736_p5 = por %p40_p2, %p39_p0  ;;  %p2740_p6 = por %p46_p4, %p45_p3 }
   0xc   : > { %p237_p7 = scmp.eq.s32.totalorder %s2718_s13, 1  ;;  %p243_p8 = scmp.eq.s32.totalorder %s2031_s14, 1 }
   0xd   : > { %p2363_p10 = scmp.lt.s32.totalorder %s2640_s12, 2  ;;  %s287_s23 = sand.u32 1, %s2636_s11  }
   0xe   : > { %p2747_p11 = por %p237_p7, %p39_p0  ;;  %p2751_p12 = por %p243_p8, %p45_p3 }
   0xf   : > { %s2111_s24 = sshll.u32 %s2640_s12, 12  ;;  %s2034_s25 = sshll.u32 %s287_s23, 8 }
  0x10   : > { %s3498_s21 = scalar_select %p2747_p11, 1, 0 }
  0x11   : > { %s3499_s22 = scalar_select %p2751_p12, 1, 0 }
  0x12   : > { %s2760_s28 = scalar_lea.hbm %s3485_s0, %s2111_s24  ;;  %s291_s29 = scalar_lea.vmem [#allocation2], %s2034_s25 }
  0x13   : > { %s298_s14 = sshll.u32 %s291_s29, 4  ;;  %p2764_p13 = pnand %p2363_p10, %p2736_p5  ;;  %s2768_s14 = int_to_ptr.vmem [resolvable:$true] %s298_s14 }
  0x14   : > { %s2770_s17 = scalar_lea.sflag [#allocation3], %s287_s23  ;;  %s2544_s26 = scalar_lea.hbm %s2760_s28, 4096 }
  0x15   : > { %p2545_p0 = scmp.ne.s32.totalorder %s2760_s28, %s2544_s26  ;;  %p2546_p1 = pneg %p2764_p13 }
  0x16   : > { %s2549_s25 = scalar_lea.hbm %s3485_s0, 8192  ;;  %p2550_p4 = scmp.lt.u32.totalorder %s2760_s28, %s3485_s0 }
  0x17   : > { %p2547_p2 = pnand %p2546_p1, %p2545_p0  ;;  %p2551_p5 = scmp.lt.u32.totalorder %s2549_s25, %s2544_s26 }
  0x18   : > { %p2553_p8 = scmp.lt.u32.totalorder %s2544_s26, %s2760_s28 }
  0x19   : > { %p2548_p3 = pneg %p2547_p2  ;;  %p2552_p7 = por %p2551_p5, %p2550_p4 }
  0x1b   : > { %p2554_p10 = por %p2553_p8, %p2552_p7 }
  0x1d   : > { %p2555_p9 = pnand %p2554_p10, %p2548_p3 }
  0x1f   : > { %2558 = shalt.err (!%p2555_p9)
}
  0x20   : > { %s2559_s23 = scalar_lea.vmem %s2768_s14, 4096  ;;  %s2642_s24 = smov [#allocation2]  }
  0x21   : > { %p2560_p0 = scmp.ne.s32.totalorder %s2768_s14, %s2559_s23  ;;  %s2564_s19 = sshll.u32 %s2642_s24, 4  ;;  %s2565_s19 = int_to_ptr.vmem [resolvable:$false] %s2564_s19 }
  0x22   : > { %s2566_s27 = scalar_lea.vmem %s2565_s19, 8192  ;;  %p2567_p11 = scmp.lt.s32.totalorder %s2768_s14, %s2565_s19 }
  0x23   : > { %p2562_p2 = pnand %p2560_p0, %p2546_p1  ;;  %p2568_p4 = scmp.lt.s32.totalorder %s2566_s27, %s2559_s23 }
  0x25   : > { %p2563_p12 = pneg %p2562_p2  ;;  %p2569_p5 = por %p2568_p4, %p2567_p11 }
  0x27   : > { %p2570_p7 = pnand %p2569_p5, %p2563_p12 }
  0x29   : > { %2573 = shalt.err (!%p2570_p7)
}
  0x2a   : > { %s2643_s26 = smov 128   ;;  %s2644_s25 = smov 8  }
  0x2b   : > { %2358 = dma.hbm_to_vmem [thread:$0]  (!%p2764_p13), %s2760_s28, 4096, %s2768_s14, %s2770_s17, %s2643_s26, %s2643_s26, %s2644_s25  }
  0x2c   : > { %p2037_p9 = scmp.ge.s32.totalorder %s2640_s12, 1  ;;  %p306_p1 = scmp.lt.s32.totalorder %s2640_s12, 3 }
  0x2e   : > { %p307_p3 = pnand %p2037_p9, %p306_p1 }
  0x2f   : > { %s2801_s29 = sand.u32 (!%p307_p3), 1, %s2632_s10  }
  0x30   : > { %310 = sbr.rel (%p307_p3) target bundleno = 1300 (0x514), region = 56  ;;  %s2038_s23 = sshll.u32 (!%p307_p3), %s2801_s29, 8 }
  0x31   : > { %s313_s24 = scalar_lea.sflag (!%p307_p3), [#allocation3], %s2801_s29  ;;  %s2805_s19 = scalar_lea.vmem (!%p307_p3), [#allocation2], %s2038_s23 }
  0x37   : > { %2619 = dma.done.wait (%p2740_p6), %s313_s24, 4096  }
  0x38   : > { %2621 = vsyncadd (%p2740_p6), %s313_s24, 4294963200  ;;  %v2400_v0 = vld [vmem:[%s3486_s1] sm:$0xff]   ;;  %v2401_v1 = vld [vmem:[%s3486_s1 + $0x8] sm:$0xff]   ;;  %vm705_vm0 = vcmask 261120   ;;  %s2039_s26 = sshll.u32 %s2801_s29, 1  ;;  %s2112_s20 = sshll.u32 %s2718_s13, 5 }
  0x39   : > { %2191 = vmatprep.subr.bf16.mxu0 %v2400_v0  ;;  %v2402_v2 = vld [vmem:[%s3486_s1 + $0x10] sm:$0xff]   ;;  %v2403_v3 = vld [vmem:[%s3486_s1 + $0x18] sm:$0xff]   ;;  %v2824_v4 = vld [vmem:[%s2805_s19] sm:$0xff]  ;;  %s350_s25 = scalar_lea.vmem [#allocation5], %s2039_s26  ;;  %s3441_s14 = scalar_lea.hbm %s3494_s9, %s2112_s20 }
  0x3a   : > { %2192 = vmatpush3.bf16.msra.mxu0 %v2400_v0  ;;  %v2827_v5 = vld [vmem:[%s2805_s19 + $0x8] sm:$0xff]  ;;  %v2830_v6 = vld [vmem:[%s2805_s19 + $0x10] sm:$0xff]  ;;  %1475 = vmax.xlane.f32.xlu0 %v2824_v4  ;;  %v2404_v8 = vld [vmem:[%s3486_s1 + $0x20] sm:$0xff]   ;;  %s1961_s23 = sshll.u32 %s350_s25, 4  ;;  %s1947_s16 = scalar_lea.sflag [#allocation4], %s2801_s29  ;;  %s3443_s23 = int_to_ptr.vmem [resolvable:$true] %s1961_s23 }
  0x3b   : > { %2193 = vmatprep.subr.bf16.mxu0 %v2401_v1  ;;  %v386_v7 = vpack.c.bf16 %v2827_v5, %v2824_v4  ;;  %1479 = vmax.xlane.f32.xlu1 %v2830_v6  ;;  %v2840_v9 = vld [vmem:[%s2805_s19 + $0x18] sm:$0xff]  ;;  %v2405_v10 = vld [vmem:[%s3486_s1 + $0x28] sm:$0xff]   ;;  %v2848_v11 = vld [vmem:[%s2805_s19 + $0x20] sm:$0xff]  ;;  %s2574_s17 = scalar_lea.vmem %s3443_s23, 32  ;;  %p3501_p11 = scmp.ne.s32.totalorder %s3498_s21, 0 }
  0x3c   : > { %v2851_v12 = vld [vmem:[%s2805_s19 + $0x28] sm:$0xff]  ;;  %v2406_v13 = vld [vmem:[%s3486_s1 + $0x30] sm:$0xff]   ;;  %v2862_v15 = vld [vmem:[%s2805_s19 + $0x38] sm:$0xff]  ;;  %v387_v21 = vpack.c.bf16 %v2840_v9, %v2830_v6  ;;  %p2575_p6 = scmp.ne.s32.totalorder %s3443_s23, %s2574_s17  ;;  %s2646_s13 = smov [#allocation5]  }
  0x3d   : > { %2207 = vmatprep.mubr.bf16.mxu0 %v386_v7  ;;  %v2859_v14 = vld [vmem:[%s2805_s19 + $0x30] sm:$0xff]  ;;  %v2407_v16 = vld [vmem:[%s3486_s1 + $0x38] sm:$0xff]   ;;  %v2870_v17 = vld [vmem:[%s2805_s19 + $0x40] sm:$0xff]  ;;  %v388_v22 = vpack.c.bf16 %v2851_v12, %v2848_v11 }
  0x3e   : > { %2194 = vmatpush3.bf16.msra.mxu0 %v2401_v1  ;;  %1477 = vmax.xlane.f32.xlu0 %v2827_v5  ;;  %v2873_v18 = vld [vmem:[%s2805_s19 + $0x48] sm:$0xff]  ;;  %v2878_v19 = vld [vmem:[%s2805_s19 + $0x50] sm:$0xff]  ;;  %v2881_v20 = vld [vmem:[%s2805_s19 + $0x58] sm:$0xff]  ;;  %v389_v27 = vpack.c.bf16 %v2862_v15, %v2859_v14  ;;  %p2576_p12 = pnand %p2575_p6, %p3501_p11 }
  0x3f   : > { %2195 = vmatprep.subr.bf16.mxu0 %v2402_v2  ;;  %1481 = vmax.xlane.f32.xlu1 %v2840_v9  ;;  %v2890_v23 = vld [vmem:[%s2805_s19 + $0x60] sm:$0xff]  ;;  %v2893_v24 = vld [vmem:[%s2805_s19 + $0x68] sm:$0xff]  ;;  %v2898_v25 = vld [vmem:[%s2805_s19 + $0x70] sm:$0xff]  ;;  %v390_v28 = vpack.c.bf16 %v2873_v18, %v2870_v17  ;;  %v391_v33 = vpack.c.bf16 %v2881_v20, %v2878_v19 }
  0x40   : > { %v2901_v26 = vld [vmem:[%s2805_s19 + $0x78] sm:$0xff]  ;;  %v2910_v29 = vld [vmem:[%s2805_s19 + $0x80] sm:$0xff]  ;;  %v2913_v30 = vld [vmem:[%s2805_s19 + $0x88] sm:$0xff]  ;;  %v392_v34 = vpack.c.bf16 %v2893_v24, %v2890_v23  ;;  %p2577_p13 = pneg %p2576_p12 }
  0x41   : > { %v2918_v31 = vld [vmem:[%s2805_s19 + $0x90] sm:$0xff]  ;;  %v2921_v32 = vld [vmem:[%s2805_s19 + $0x98] sm:$0xff]  ;;  %v2930_v35 = vld [vmem:[%s2805_s19 + $0xa0] sm:$0xff]  ;;  %v393_v39 = vpack.c.bf16 %v2901_v26, %v2898_v25  ;;  %v394_v40 = vpack.c.bf16 %v2913_v30, %v2910_v29 }
  0x42   : > { %2196 = vmatpush3.bf16.msra.mxu0 %v2402_v2  ;;  %1483 = vmax.xlane.f32.xlu0 %v2848_v11  ;;  %v2933_v36 = vld [vmem:[%s2805_s19 + $0xa8] sm:$0xff]  ;;  %v2938_v37 = vld [vmem:[%s2805_s19 + $0xb0] sm:$0xff]  ;;  %v2941_v38 = vld [vmem:[%s2805_s19 + $0xb8] sm:$0xff]  ;;  %v395_v45 = vpack.c.bf16 %v2921_v32, %v2918_v31 }
  0x43   : > { %2197 = vmatprep.subr.bf16.mxu0 %v2403_v3  ;;  %1485 = vmax.xlane.f32.xlu1 %v2851_v12  ;;  %v2950_v41 = vld [vmem:[%s2805_s19 + $0xc0] sm:$0xff]  ;;  %v2953_v42 = vld [vmem:[%s2805_s19 + $0xc8] sm:$0xff]  ;;  %v2958_v43 = vld [vmem:[%s2805_s19 + $0xd0] sm:$0xff]  ;;  %v396_v46 = vpack.c.bf16 %v2933_v36, %v2930_v35  ;;  %v397_v51 = vpack.c.bf16 %v2941_v38, %v2938_v37 }
  0x44   : > { %v2961_v44 = vld [vmem:[%s2805_s19 + $0xd8] sm:$0xff]  ;;  %v2970_v47 = vld [vmem:[%s2805_s19 + $0xe0] sm:$0xff]  ;;  %v2973_v48 = vld [vmem:[%s2805_s19 + $0xe8] sm:$0xff]  ;;  %v398_v52 = vpack.c.bf16 %v2953_v42, %v2950_v41 }
  0x45   : > { %v384_v49 = vld [vmem:[%s2805_s19 + $0xf0] sm:$0xff]  ;;  %v385_v50 = vld [vmem:[%s2805_s19 + $0xf8] sm:$0xff]  ;;  %v399_v53 = vpack.c.bf16 %v2961_v44, %v2958_v43  ;;  %v400_v54 = vpack.c.bf16 %v2973_v48, %v2970_v47  ;;  %v2408_v56 = vld [vmem:[%s3488_s3] sm:$0xff]  }
  0x46   : > { %2198 = vmatpush3.bf16.msra.mxu0 %v2403_v3  ;;  %1487 = vmax.xlane.f32.xlu0 %v2859_v14  ;;  %v401_v55 = vpack.c.bf16 %v385_v50, %v384_v49  ;;  %v2409_v57 = vld [vmem:[%s3488_s3 + $0x8] sm:$0xff]   ;;  %v2410_v58 = vld [vmem:[%s3490_s5] sm:$0xff]  }
  0x47   : > { %2199 = vmatprep.subr.bf16.mxu0 %v2404_v8  ;;  %1489 = vmax.xlane.f32.xlu1 %v2862_v15  ;;  %v2999_v59 = vld [vmem:[%s3487_s2] ss:$0 sm:$0xff] }
  0x48   : > { %2239 = vmatprep.subr.bf16.mxu1 %v2408_v56 }
  0x49   : > { %2240 = vmatpush3.bf16.msra.mxu1 %v2408_v56 }
  0x4a   : > { %2200 = vmatpush3.bf16.msra.mxu0 %v2404_v8  ;;  %1491 = vmax.xlane.f32.xlu0 %v2870_v17 }
  0x4b   : > { %2201 = vmatprep.subr.bf16.mxu0 %v2405_v10  ;;  %1493 = vmax.xlane.f32.xlu1 %v2873_v18 }
  0x4c   : > { %2241 = vmatprep.subr.bf16.mxu1 %v2409_v57 }
  0x4d   : > { %2242 = vmatpush3.bf16.msra.mxu1 %v2409_v57 }
  0x4e   : > { %2202 = vmatpush3.bf16.msra.mxu0 %v2405_v10  ;;  %1495 = vmax.xlane.f32.xlu0 %v2878_v19 }
  0x4f   : > { %2203 = vmatprep.subr.bf16.mxu0 %v2406_v13  ;;  %1497 = vmax.xlane.f32.xlu1 %v2881_v20 }
  0x50   : > { %2275 = vmatprep.subr.bf16.mxu1 %v2410_v58 }
  0x52   : > { %2204 = vmatpush3.bf16.msra.mxu0 %v2406_v13  ;;  %1499 = vmax.xlane.f32.xlu0 %v2890_v23 }
  0x53   : > { %2205 = vmatprep.subr.bf16.mxu0 %v2407_v16  ;;  %1501 = vmax.xlane.f32.xlu1 %v2893_v24 }
  0x56   : > { %2206 = vmatpush3.bf16.msra.mxu0 %v2407_v16  ;;  %1503 = vmax.xlane.f32.xlu0 %v2898_v25 }
  0x57   : > { %1505 = vmax.xlane.f32.xlu1 %v2901_v26 }
  0x59   : > { %2208 = vmatmul.mubr.bf16.vlgmr.msra.gmra.mrb[0].mxu0 %v387_v21 }
  0x5a   : > { %2211 = vmatprep.mubr.bf16.mxu0 %v388_v22  ;;  %1507 = vmax.xlane.f32.xlu0 %v2910_v29 }
  0x5b   : > { %1509 = vmax.xlane.f32.xlu1 %v2913_v30 }
  0x5e   : > { %1511 = vmax.xlane.f32.xlu0 %v2918_v31 }
  0x5f   : > { %1513 = vmax.xlane.f32.xlu1 %v2921_v32 }
  0x61   : > { %2212 = vmatmul.mubr.bf16.gmra.mrb[4].mxu0 %v389_v27 }
  0x62   : > { %2215 = vmatprep.mubr.bf16.mxu0 %v390_v28  ;;  %1515 = vmax.xlane.f32.xlu0 %v2930_v35 }
  0x63   : > { %1517 = vmax.xlane.f32.xlu1 %v2933_v36 }
  0x66   : > { %1519 = vmax.xlane.f32.xlu0 %v2938_v37 }
  0x67   : > { %1521 = vmax.xlane.f32.xlu1 %v2941_v38 }
  0x69   : > { %2216 = vmatmul.mubr.bf16.gmra.mrb[8].mxu0 %v391_v33  ;;  %v2411_v33 = vld [vmem:[%s3490_s5 + $0x8] sm:$0xff]  }
  0x6a   : > { %2219 = vmatprep.mubr.bf16.mxu0 %v392_v34  ;;  %1523 = vmax.xlane.f32.xlu0 %v2950_v41 }
  0x6b   : > { %1525 = vmax.xlane.f32.xlu1 %v2953_v42 }
  0x6e   : > { %1527 = vmax.xlane.f32.xlu0 %v2958_v43 }
  0x6f   : > { %1529 = vmax.xlane.f32.xlu1 %v2961_v44 }
  0x71   : > { %2220 = vmatmul.mubr.bf16.gmra.mrb[12].mxu0 %v393_v39 }
  0x72   : > { %2223 = vmatprep.mubr.bf16.mxu0 %v394_v40  ;;  %1531 = vmax.xlane.f32.xlu0 %v2970_v47 }
  0x73   : > { %1533 = vmax.xlane.f32.xlu1 %v2973_v48 }
  0x76   : > { %1535 = vmax.xlane.f32.xlu0 %v384_v49 }
  0x77   : > { %1537 = vmax.xlane.f32.xlu1 %v385_v50 }
  0x79   : > { %2224 = vmatmul.mubr.bf16.gmra.mrb[16].mxu0 %v395_v45 }
  0x7a   : > { %2227 = vmatprep.mubr.bf16.mxu0 %v396_v46 }
  0x81   : > { %2228 = vmatmul.mubr.bf16.gmra.mrb[20].mxu0 %v397_v51 }
  0x82   : > { %2231 = vmatprep.mubr.bf16.mxu0 %v398_v52 }
  0x89   : > { %2232 = vmatmul.mubr.bf16.gmra.mrb[24].mxu0 %v399_v53 }
  0x8a   : > { %2235 = vmatprep.mubr.bf16.mxu0 %v400_v54 }
  0x91   : > { %2236 = vmatmul.mubr.bf16.gmra.mrb[28].mxu0 %v401_v55 }
 0x12c   : > { %v2209_v60 = vpop.f32.mrb[0].mxu0 }
 0x12d   : > { %v516_v61 = vadd.f32 %v2209_v60, %v2999_v59  ;;  %v507_v62 = vpop.f32.mrb[1].mxu0 }
 0x12e   : > { %v508_v63 = vadd.f32 %v2999_v59, %v507_v62  ;;  %v2210_v0 = vpop.f32.mrb[2].mxu0 }
 0x12f   : > { %v519_v1 = vadd.f32 %v2210_v0, %v2999_v59  ;;  %v510_v2 = vpop.f32.mrb[3].mxu0  ;;  %v636_v7 = vmax.f32 %v516_v61, 0.0 }
 0x130   : > { %v511_v3 = vadd.f32 %v2999_v59, %v510_v2  ;;  %v634_v10 = vmax.f32 %v508_v63, 0.0 }
 0x131   : > { %v637_v8 = vmax.f32 %v519_v1, 0.0 }
 0x132   : > { %v635_v13 = vmax.f32 %v511_v3, 0.0 }
 0x133   : > { %v667_v16 = vpack.c.bf16 %v637_v8, %v636_v7 }
 0x134   : > { %v2213_v21 = vpop.f32.mrb[4].mxu0  ;;  %v666_v22 = vpack.c.bf16 %v635_v13, %v634_v10 }
 0x135   : > { %v532_v27 = vadd.f32 %v2213_v21, %v2999_v59  ;;  %v523_v28 = vpop.f32.mrb[5].mxu0 }
 0x136   : > { %v524_v34 = vadd.f32 %v2999_v59, %v523_v28  ;;  %v2214_v39 = vpop.f32.mrb[6].mxu0  ;;  %2243 = vmatprep.mubr.msk.bf16.mxu1 %vm705_vm0, %v666_v22 }
 0x137   : > { %v535_v40 = vadd.f32 %v2214_v39, %v2999_v59  ;;  %v526_v45 = vpop.f32.mrb[7].mxu0  ;;  %2244 = vmatmul.mubr.msk.bf16.vlgmr.msra.gmra.mrb[0].mxu1 %vm705_vm0, %v667_v16  ;;  %v640_v49 = vmax.f32 %v532_v27, 0.0 }
 0x138   : > { %v527_v46 = vadd.f32 %v2999_v59, %v526_v45  ;;  %2276 = vmatpush3.bf16.msra.mxu1 %v2410_v58  ;;  %v638_v51 = vmax.f32 %v524_v34, 0.0 }
 0x139   : > { %v641_v50 = vmax.f32 %v535_v40, 0.0  ;;  %2277 = vmatprep.subr.bf16.mxu1 %v2411_v33 }
 0x13a   : > { %v639_v52 = vmax.f32 %v527_v46, 0.0 }
 0x13b   : > { %v669_v53 = vpack.c.bf16 %v641_v50, %v640_v49 }
 0x13c   : > { %v668_v54 = vpack.c.bf16 %v639_v52, %v638_v51  ;;  %v2217_v55 = vpop.f32.mrb[8].mxu0  ;;  %2278 = vmatpush3.bf16.msra.mxu1 %v2411_v33 }
 0x13d   : > { %v548_v56 = vadd.f32 %v2217_v55, %v2999_v59  ;;  %v539_v57 = vpop.f32.mrb[9].mxu0 }
 0x13e   : > { %v540_v60 = vadd.f32 %v2999_v59, %v539_v57  ;;  %v2218_v61 = vpop.f32.mrb[10].mxu0  ;;  %2247 = vmatprep.mubr.msk.bf16.mxu1 %vm705_vm0, %v668_v54 }
 0x13f   : > { %v551_v62 = vadd.f32 %v2218_v61, %v2999_v59  ;;  %v542_v58 = vpop.f32.mrb[11].mxu0  ;;  %2248 = vmatmul.mubr.msk.bf16.gmra.mrb[4].mxu1 %vm705_vm0, %v669_v53  ;;  %v644_v0 = vmax.f32 %v548_v56, 0.0 }
 0x140   : > { %v543_v63 = vadd.f32 %v2999_v59, %v542_v58  ;;  %v642_v2 = vmax.f32 %v540_v60, 0.0 }
 0x141   : > { %v645_v1 = vmax.f32 %v551_v62, 0.0 }
 0x142   : > { %v643_v3 = vmax.f32 %v543_v63, 0.0 }
 0x143   : > { %v671_v7 = vpack.c.bf16 %v645_v1, %v644_v0 }
 0x144   : > { %v670_v8 = vpack.c.bf16 %v643_v3, %v642_v2  ;;  %v2221_v10 = vpop.f32.mrb[12].mxu0 }
 0x145   : > { %v564_v13 = vadd.f32 %v2221_v10, %v2999_v59  ;;  %v555_v16 = vpop.f32.mrb[13].mxu0 }
 0x146   : > { %v556_v21 = vadd.f32 %v2999_v59, %v555_v16  ;;  %v2222_v22 = vpop.f32.mrb[14].mxu0  ;;  %2251 = vmatprep.mubr.msk.bf16.mxu1 %vm705_vm0, %v670_v8 }
 0x147   : > { %v567_v27 = vadd.f32 %v2222_v22, %v2999_v59  ;;  %v558_v28 = vpop.f32.mrb[15].mxu0  ;;  %2252 = vmatmul.mubr.msk.bf16.gmra.mrb[8].mxu1 %vm705_vm0, %v671_v7  ;;  %v648_v34 = vmax.f32 %v564_v13, 0.0 }
 0x148   : > { %v559_v33 = vadd.f32 %v2999_v59, %v558_v28  ;;  %v646_v40 = vmax.f32 %v556_v21, 0.0 }
 0x149   : > { %v649_v39 = vmax.f32 %v567_v27, 0.0 }
 0x14a   : > { %v647_v45 = vmax.f32 %v559_v33, 0.0 }
 0x14b   : > { %v673_v46 = vpack.c.bf16 %v649_v39, %v648_v34 }
 0x14c   : > { %v672_v49 = vpack.c.bf16 %v647_v45, %v646_v40  ;;  %v2225_v50 = vpop.f32.mrb[16].mxu0 }
 0x14d   : > { %v580_v51 = vadd.f32 %v2225_v50, %v2999_v59  ;;  %v571_v52 = vpop.f32.mrb[17].mxu0 }
 0x14e   : > { %v572_v53 = vadd.f32 %v2999_v59, %v571_v52  ;;  %v2226_v54 = vpop.f32.mrb[18].mxu0  ;;  %2255 = vmatprep.mubr.msk.bf16.mxu1 %vm705_vm0, %v672_v49 }
 0x14f   : > { %v583_v55 = vadd.f32 %v2226_v54, %v2999_v59  ;;  %v574_v56 = vpop.f32.mrb[19].mxu0  ;;  %2256 = vmatmul.mubr.msk.bf16.gmra.mrb[12].mxu1 %vm705_vm0, %v673_v46  ;;  %v652_v60 = vmax.f32 %v580_v51, 0.0 }
 0x150   : > { %v575_v57 = vadd.f32 %v2999_v59, %v574_v56  ;;  %v650_v62 = vmax.f32 %v572_v53, 0.0 }
 0x151   : > { %v653_v61 = vmax.f32 %v583_v55, 0.0 }
 0x152   : > { %v651_v58 = vmax.f32 %v575_v57, 0.0 }
 0x153   : > { %v675_v63 = vpack.c.bf16 %v653_v61, %v652_v60 }
 0x154   : > { %v674_v0 = vpack.c.bf16 %v651_v58, %v650_v62  ;;  %v2229_v1 = vpop.f32.mrb[20].mxu0 }
 0x155   : > { %v596_v2 = vadd.f32 %v2229_v1, %v2999_v59  ;;  %v587_v3 = vpop.f32.mrb[21].mxu0 }
 0x156   : > { %v588_v7 = vadd.f32 %v2999_v59, %v587_v3  ;;  %v2230_v8 = vpop.f32.mrb[22].mxu0  ;;  %2259 = vmatprep.mubr.msk.bf16.mxu1 %vm705_vm0, %v674_v0 }
 0x157   : > { %v656_v10 = vmax.f32 %v596_v2, 0.0  ;;  %v599_v13 = vadd.f32 %v2230_v8, %v2999_v59  ;;  %v590_v16 = vpop.f32.mrb[23].mxu0  ;;  %2260 = vmatmul.mubr.msk.bf16.gmra.mrb[16].mxu1 %vm705_vm0, %v675_v63 }
 0x158   : > { %v654_v21 = vmax.f32 %v588_v7, 0.0  ;;  %v591_v22 = vadd.f32 %v2999_v59, %v590_v16 }
 0x159   : > { %v657_v27 = vmax.f32 %v599_v13, 0.0 }
 0x15a   : > { %v655_v28 = vmax.f32 %v591_v22, 0.0  ;;  %v2412_v22 = vld [vmem:[%s3492_s7] sm:$0xff]  }
 0x15b   : > { %v677_v33 = vpack.c.bf16 %v657_v27, %v656_v10  ;;  %v2413_v27 = vld [vmem:[%s3492_s7 + $0x8] sm:$0xff]   ;;  %2311 = vmatprep.subr.bf16.mxu0 %v2412_v22  ;;  %2347 = vmatprep.subr.bf16.mxu1 %v2412_v22 }
 0x15c   : > { %v676_v34 = vpack.c.bf16 %v655_v28, %v654_v21  ;;  %v2233_v39 = vpop.f32.mrb[24].mxu0  ;;  %2312 = vmatpush3.bf16.msra.mxu0 %v2412_v22 }
 0x15d   : > { %v612_v40 = vadd.f32 %v2233_v39, %v2999_v59  ;;  %v603_v45 = vpop.f32.mrb[25].mxu0  ;;  %2313 = vmatprep.subr.bf16.mxu0 %v2413_v27 }
 0x15e   : > { %v604_v46 = vadd.f32 %v2999_v59, %v603_v45  ;;  %v2234_v49 = vpop.f32.mrb[26].mxu0  ;;  %2263 = vmatprep.mubr.msk.bf16.mxu1 %vm705_vm0, %v676_v34 }
 0x15f   : > { %v660_v50 = vmax.f32 %v612_v40, 0.0  ;;  %v615_v51 = vadd.f32 %v2234_v49, %v2999_v59  ;;  %v606_v52 = vpop.f32.mrb[27].mxu0  ;;  %2264 = vmatmul.mubr.msk.bf16.gmra.mrb[20].mxu1 %vm705_vm0, %v677_v33 }
 0x160   : > { %v658_v53 = vmax.f32 %v604_v46, 0.0  ;;  %v607_v54 = vadd.f32 %v2999_v59, %v606_v52  ;;  %2314 = vmatpush3.bf16.msra.mxu0 %v2413_v27 }
 0x161   : > { %v661_v55 = vmax.f32 %v615_v51, 0.0 }
 0x162   : > { %v659_v56 = vmax.f32 %v607_v54, 0.0 }
 0x163   : > { %v679_v57 = vpack.c.bf16 %v661_v55, %v660_v50 }
 0x164   : > { %v678_v60 = vpack.c.bf16 %v659_v56, %v658_v53  ;;  %v2237_v61 = vpop.f32.mrb[28].mxu0 }
 0x165   : > { %v628_v62 = vadd.f32 %v2237_v61, %v2999_v59  ;;  %v619_v58 = vpop.f32.mrb[29].mxu0 }
 0x166   : > { %v620_v63 = vadd.f32 %v2999_v59, %v619_v58  ;;  %v2238_v0 = vpop.f32.mrb[30].mxu0  ;;  %2267 = vmatprep.mubr.msk.bf16.mxu1 %vm705_vm0, %v678_v60 }
 0x167   : > { %v664_v1 = vmax.f32 %v628_v62, 0.0  ;;  %v631_v2 = vadd.f32 %v2238_v0, %v2999_v59  ;;  %v622_v3 = vpop.f32.mrb[31].mxu0  ;;  %2268 = vmatmul.mubr.msk.bf16.gmra.mrb[24].mxu1 %vm705_vm0, %v679_v57 }
 0x168   : > { %v662_v7 = vmax.f32 %v620_v63, 0.0  ;;  %v623_v8 = vadd.f32 %v2999_v59, %v622_v3  ;;  %v3061_v59 = vld [vmem:[%s3489_s4] ss:$0 sm:$0xff] }
 0x169   : > { %v665_v10 = vmax.f32 %v631_v2, 0.0 }
 0x16a   : > { %v663_v13 = vmax.f32 %v623_v8, 0.0 }
 0x16b   : > { %v681_v16 = vpack.c.bf16 %v665_v10, %v664_v1 }
 0x16c   : > { %v680_v21 = vpack.c.bf16 %v663_v13, %v662_v7 }
 0x16e   : > { %2271 = vmatprep.mubr.msk.bf16.mxu1 %vm705_vm0, %v680_v21 }
 0x16f   : > { %2272 = vmatmul.mubr.msk.bf16.gmra.mrb[28].mxu1 %vm705_vm0, %v681_v16 }
 0x20a   : > { %v2245_v28 = vpop.f32.mrb[0].mxu1 }
 0x20b   : > { %v797_v33 = vadd.f32 %v2245_v28, %v3061_v59  ;;  %v788_v34 = vpop.f32.mrb[1].mxu1 }
 0x20c   : > { %v789_v39 = vadd.f32 %v3061_v59, %v788_v34  ;;  %v2246_v40 = vpop.f32.mrb[2].mxu1 }
 0x20d   : > { %v800_v45 = vadd.f32 %v2246_v40, %v3061_v59  ;;  %v791_v46 = vpop.f32.mrb[3].mxu1  ;;  %v917_v50 = vmax.f32 %v797_v33, 0.0 }
 0x20e   : > { %v792_v49 = vadd.f32 %v3061_v59, %v791_v46  ;;  %v915_v52 = vmax.f32 %v789_v39, 0.0 }
 0x20f   : > { %v918_v51 = vmax.f32 %v800_v45, 0.0 }
 0x210   : > { %v916_v53 = vmax.f32 %v792_v49, 0.0 }
 0x211   : > { %v948_v54 = vpack.c.bf16 %v918_v51, %v917_v50 }
 0x212   : > { %v947_v55 = vpack.c.bf16 %v916_v53, %v915_v52  ;;  %v2249_v56 = vpop.f32.mrb[4].mxu1 }
 0x213   : > { %v813_v57 = vadd.f32 %v2249_v56, %v3061_v59  ;;  %v804_v60 = vpop.f32.mrb[5].mxu1 }
 0x214   : > { %v805_v61 = vadd.f32 %v3061_v59, %v804_v60  ;;  %v2250_v62 = vpop.f32.mrb[6].mxu1  ;;  %2279 = vmatprep.mubr.msk.bf16.mxu1 %vm705_vm0, %v947_v55 }
 0x215   : > { %v816_v58 = vadd.f32 %v2250_v62, %v3061_v59  ;;  %v807_v63 = vpop.f32.mrb[7].mxu1  ;;  %2280 = vmatmul.mubr.msk.bf16.vlgmr.msra.gmra.mrb[32].mxu1 %vm705_vm0, %v948_v54  ;;  %v921_v1 = vmax.f32 %v813_v57, 0.0 }
 0x216   : > { %v808_v0 = vadd.f32 %v3061_v59, %v807_v63  ;;  %2349 = vmatpush3.bf16.msra.mxu1 %v2412_v22  ;;  %v919_v3 = vmax.f32 %v805_v61, 0.0 }
 0x217   : > { %v922_v2 = vmax.f32 %v816_v58, 0.0  ;;  %2348 = vmatprep.subr.bf16.mxu1 %v2413_v27 }
 0x218   : > { %v920_v7 = vmax.f32 %v808_v0, 0.0 }
 0x219   : > { %v950_v8 = vpack.c.bf16 %v922_v2, %v921_v1 }
 0x21a   : > { %v949_v10 = vpack.c.bf16 %v920_v7, %v919_v3  ;;  %v2253_v13 = vpop.f32.mrb[8].mxu1  ;;  %2350 = vmatpush3.bf16.msra.mxu1 %v2413_v27 }
 0x21b   : > { %v829_v16 = vadd.f32 %v2253_v13, %v3061_v59  ;;  %v820_v21 = vpop.f32.mrb[9].mxu1 }
 0x21c   : > { %v821_v28 = vadd.f32 %v3061_v59, %v820_v21  ;;  %v2254_v33 = vpop.f32.mrb[10].mxu1  ;;  %2283 = vmatprep.mubr.msk.bf16.mxu1 %vm705_vm0, %v949_v10 }
 0x21d   : > { %v832_v34 = vadd.f32 %v2254_v33, %v3061_v59  ;;  %v823_v22 = vpop.f32.mrb[11].mxu1  ;;  %2284 = vmatmul.mubr.msk.bf16.gmra.mrb[36].mxu1 %vm705_vm0, %v950_v8  ;;  %v925_v40 = vmax.f32 %v829_v16, 0.0 }
 0x21e   : > { %v824_v39 = vadd.f32 %v3061_v59, %v823_v22  ;;  %v923_v46 = vmax.f32 %v821_v28, 0.0 }
 0x21f   : > { %v926_v45 = vmax.f32 %v832_v34, 0.0 }
 0x220   : > { %v924_v49 = vmax.f32 %v824_v39, 0.0 }
 0x221   : > { %v952_v27 = vpack.c.bf16 %v926_v45, %v925_v40 }
 0x222   : > { %v951_v50 = vpack.c.bf16 %v924_v49, %v923_v46  ;;  %v2257_v51 = vpop.f32.mrb[12].mxu1 }
 0x223   : > { %v845_v52 = vadd.f32 %v2257_v51, %v3061_v59  ;;  %v836_v53 = vpop.f32.mrb[13].mxu1 }
 0x224   : > { %v837_v54 = vadd.f32 %v3061_v59, %v836_v53  ;;  %v2258_v55 = vpop.f32.mrb[14].mxu1  ;;  %2287 = vmatprep.mubr.msk.bf16.mxu1 %vm705_vm0, %v951_v50 }
 0x225   : > { %v848_v56 = vadd.f32 %v2258_v55, %v3061_v59  ;;  %v839_v57 = vpop.f32.mrb[15].mxu1  ;;  %2288 = vmatmul.mubr.msk.bf16.gmra.mrb[40].mxu1 %vm705_vm0, %v952_v27  ;;  %v929_v61 = vmax.f32 %v845_v52, 0.0 }
 0x226   : > { %v840_v60 = vadd.f32 %v3061_v59, %v839_v57  ;;  %v927_v58 = vmax.f32 %v837_v54, 0.0 }
 0x227   : > { %v930_v62 = vmax.f32 %v848_v56, 0.0 }
 0x228   : > { %v928_v63 = vmax.f32 %v840_v60, 0.0 }
 0x229   : > { %v954_v0 = vpack.c.bf16 %v930_v62, %v929_v61 }
 0x22a   : > { %v953_v1 = vpack.c.bf16 %v928_v63, %v927_v58  ;;  %v2261_v2 = vpop.f32.mrb[16].mxu1 }
 0x22b   : > { %v861_v3 = vadd.f32 %v2261_v2, %v3061_v59  ;;  %v852_v7 = vpop.f32.mrb[17].mxu1 }
 0x22c   : > { %v853_v8 = vadd.f32 %v3061_v59, %v852_v7  ;;  %v2262_v10 = vpop.f32.mrb[18].mxu1  ;;  %2291 = vmatprep.mubr.msk.bf16.mxu1 %vm705_vm0, %v953_v1 }
 0x22d   : > { %v864_v13 = vadd.f32 %v2262_v10, %v3061_v59  ;;  %v855_v16 = vpop.f32.mrb[19].mxu1  ;;  %2292 = vmatmul.mubr.msk.bf16.gmra.mrb[44].mxu1 %vm705_vm0, %v954_v0  ;;  %v933_v28 = vmax.f32 %v861_v3, 0.0 }
 0x22e   : > { %v856_v21 = vadd.f32 %v3061_v59, %v855_v16  ;;  %v931_v34 = vmax.f32 %v853_v8, 0.0 }
 0x22f   : > { %v934_v33 = vmax.f32 %v864_v13, 0.0 }
 0x230   : > { %v932_v22 = vmax.f32 %v856_v21, 0.0 }
 0x231   : > { %v956_v39 = vpack.c.bf16 %v934_v33, %v933_v28 }
 0x232   : > { %v955_v40 = vpack.c.bf16 %v932_v22, %v931_v34  ;;  %v2265_v45 = vpop.f32.mrb[20].mxu1 }
 0x233   : > { %v877_v46 = vadd.f32 %v2265_v45, %v3061_v59  ;;  %v868_v49 = vpop.f32.mrb[21].mxu1 }
 0x234   : > { %v869_v27 = vadd.f32 %v3061_v59, %v868_v49  ;;  %v2266_v50 = vpop.f32.mrb[22].mxu1  ;;  %2295 = vmatprep.mubr.msk.bf16.mxu1 %vm705_vm0, %v955_v40 }
 0x235   : > { %v937_v51 = vmax.f32 %v877_v46, 0.0  ;;  %v880_v52 = vadd.f32 %v2266_v50, %v3061_v59  ;;  %v871_v53 = vpop.f32.mrb[23].mxu1  ;;  %2296 = vmatmul.mubr.msk.bf16.gmra.mrb[48].mxu1 %vm705_vm0, %v956_v39 }
 0x236   : > { %v935_v54 = vmax.f32 %v869_v27, 0.0  ;;  %v872_v55 = vadd.f32 %v3061_v59, %v871_v53 }
 0x237   : > { %v938_v56 = vmax.f32 %v880_v52, 0.0 }
 0x238   : > { %v936_v57 = vmax.f32 %v872_v55, 0.0  ;;  %v1476_v55 = vpop.xlane.xlu0 %1475 }
 0x239   : > { %v958_v60 = vpack.c.bf16 %v938_v56, %v937_v51  ;;  %v1480_v56 = vpop.xlane.xlu1 %1479 }
 0x23a   : > { %v957_v61 = vpack.c.bf16 %v936_v57, %v935_v54  ;;  %v2269_v62 = vpop.f32.mrb[24].mxu1  ;;  %v1539_v57 = vsub.f32 %v2824_v4, %v1476_v55 }
 0x23b   : > { %v893_v58 = vadd.f32 %v2269_v62, %v3061_v59  ;;  %v884_v63 = vpop.f32.mrb[25].mxu1 }
 0x23c   : > { %v885_v0 = vadd.f32 %v3061_v59, %v884_v63  ;;  %v2270_v1 = vpop.f32.mrb[26].mxu1  ;;  %2299 = vmatprep.mubr.msk.bf16.mxu1 %vm705_vm0, %v957_v61  ;;  %v1541_v61 = vsub.f32 %v2830_v6, %v1480_v56  ;;  %v1478_v62 = vpop.xlane.xlu0 %1477 }
 0x23d   : > { %v941_v2 = vmax.f32 %v893_v58, 0.0  ;;  %v896_v3 = vadd.f32 %v2270_v1, %v3061_v59  ;;  %v887_v7 = vpop.f32.mrb[27].mxu1  ;;  %2300 = vmatmul.mubr.msk.bf16.gmra.mrb[52].mxu1 %vm705_vm0, %v958_v60  ;;  %v1571_v60 = vmul.f32 1.442695, %v1539_v57  ;;  %v1482_v58 = vpop.xlane.xlu1 %1481 }
 0x23e   : > { %v939_v8 = vmax.f32 %v885_v0, 0.0  ;;  %v888_v10 = vadd.f32 %v3061_v59, %v887_v7  ;;  %v1575_v0 = vmul.f32 1.442695, %v1541_v61  ;;  %v1542_v1 = vsub.f32 %v2840_v9, %v1482_v58 }
 0x23f   : > { %v942_v13 = vmax.f32 %v896_v3, 0.0  ;;  %2414 = vpow2.f32 %v1571_v60 }
 0x240   : > { %v940_v16 = vmax.f32 %v888_v10, 0.0  ;;  %v1577_v7 = vmul.f32 1.442695, %v1542_v1 }
 0x241   : > { %v960_v21 = vpack.c.bf16 %v942_v13, %v941_v2  ;;  %v1484_v2 = vpop.xlane.xlu0 %1483  ;;  %v1486_v3 = vpop.xlane.xlu1 %1485 }
 0x242   : > { %v959_v28 = vpack.c.bf16 %v940_v16, %v939_v8  ;;  %v2273_v33 = vpop.f32.mrb[28].mxu1  ;;  %v1543_v8 = vsub.f32 %v2848_v11, %v1484_v2  ;;  %v1544_v16 = vsub.f32 %v2851_v12, %v1486_v3 }
 0x243   : > { %v909_v34 = vadd.f32 %v2273_v33, %v3061_v59  ;;  %v900_v22 = vpop.f32.mrb[29].mxu1 }
 0x244   : > { %v901_v39 = vadd.f32 %v3061_v59, %v900_v22  ;;  %v2274_v40 = vpop.f32.mrb[30].mxu1  ;;  %2303 = vmatprep.mubr.msk.bf16.mxu1 %vm705_vm0, %v959_v28  ;;  %v1579_v6 = vmul.f32 1.442695, %v1543_v8  ;;  %v1581_v28 = vmul.f32 1.442695, %v1544_v16 }
 0x245   : > { %v945_v45 = vmax.f32 %v909_v34, 0.0  ;;  %v912_v46 = vadd.f32 %v2274_v40, %v3061_v59  ;;  %v903_v49 = vpop.f32.mrb[31].mxu1  ;;  %2304 = vmatmul.mubr.msk.bf16.gmra.mrb[56].mxu1 %vm705_vm0, %v960_v21  ;;  %v1488_v4 = vpop.xlane.xlu0 %1487 }
 0x246   : > { %v943_v27 = vmax.f32 %v901_v39, 0.0  ;;  %v904_v50 = vadd.f32 %v3061_v59, %v903_v49  ;;  %v1540_v59 = vsub.f32 %v2827_v5, %v1478_v62  ;;  %v1490_v10 = vpop.xlane.xlu1 %1489  ;;  %v1545_v33 = vsub.f32 %v2859_v14, %v1488_v4 }
 0x247   : > { %v946_v51 = vmax.f32 %v912_v46, 0.0  ;;  %v1546_v12 = vsub.f32 %v2862_v15, %v1490_v10 }
 0x248   : > { %v944_v52 = vmax.f32 %v904_v50, 0.0  ;;  %v1573_v63 = vmul.f32 1.442695, %v1540_v59  ;;  %v1583_v39 = vmul.f32 1.442695, %v1545_v33 }
 0x249   : > { %v962_v53 = vpack.c.bf16 %v946_v51, %v945_v45  ;;  %v3116_v13 = vpop.eup %2414  ;;  %v1492_v5 = vpop.xlane.xlu0 %1491  ;;  %v1585_v49 = vmul.f32 1.442695, %v1546_v12 }
 0x24a   : > { %v961_v54 = vpack.c.bf16 %v944_v52, %v943_v27  ;;  %2416 = vpow2.f32 %v1573_v63  ;;  %1731 = vadd.xlane.f32.xlu0 %v3116_v13  ;;  %v1494_v21 = vpop.xlane.xlu1 %1493  ;;  %v1547_v14 = vsub.f32 %v2870_v17, %v1492_v5 }
 0x24b   : > { %2418 = vpow2.f32 %v1575_v0  ;;  %v1548_v15 = vsub.f32 %v2873_v18, %v1494_v21 }
 0x24c   : > { %2307 = vmatprep.mubr.msk.bf16.mxu1 %vm705_vm0, %v961_v54  ;;  %2420 = vpow2.f32 %v1577_v7  ;;  %v1587_v52 = vmul.f32 1.442695, %v1547_v14 }
 0x24d   : > { %2308 = vmatmul.mubr.msk.bf16.gmra.mrb[60].mxu1 %vm705_vm0, %v962_v53  ;;  %2422 = vpow2.f32 %v1579_v6  ;;  %v1496_v11 = vpop.xlane.xlu0 %1495  ;;  %v1589_v57 = vmul.f32 1.442695, %v1548_v15 }
 0x24e   : > { %v1498_v34 = vpop.xlane.xlu1 %1497  ;;  %2424 = vpow2.f32 %v1581_v28  ;;  %v1549_v60 = vsub.f32 %v2878_v19, %v1496_v11 }
 0x24f   : > { %2426 = vpow2.f32 %v1583_v39 }
 0x250   : > { %2428 = vpow2.f32 %v1585_v49  ;;  %v1591_v0 = vmul.f32 1.442695, %v1549_v60 }
 0x251   : > { %v1500_v40 = vpop.xlane.xlu0 %1499  ;;  %2430 = vpow2.f32 %v1587_v52 }
 0x252   : > { %v1502_v45 = vpop.xlane.xlu1 %1501  ;;  %v1551_v7 = vsub.f32 %v2890_v23, %v1500_v40 }
 0x253   : > { %v1552_v10 = vsub.f32 %v2893_v24, %v1502_v45 }
 0x254   : > { %v3120_v9 = vpop.eup %2416 }
 0x255   : > { %1733 = vadd.xlane.f32.xlu0 %v3120_v9  ;;  %v3124_v22 = vpop.eup %2418  ;;  %v3132_v27 = vpop.xlane.xlu0 %1503  ;;  %v1597_v28 = vmul.f32 1.442695, %v1552_v10 }
 0x256   : > { %v3128_v46 = vpop.eup %2420  ;;  %v3134_v50 = vpop.xlane.xlu1 %1505  ;;  %v1553_v24 = vsub.f32 %v2898_v25, %v3132_v27  ;;  %v3190_v27 = vld [vmem:[%s3491_s6] ss:$0 sm:$0xff] }
 0x257   : > { %v3136_v51 = vpop.eup %2422  ;;  %v1554_v40 = vsub.f32 %v2901_v26, %v3134_v50 }
 0x258   : > { %v3140_v55 = vpop.eup %2424  ;;  %v1599_v12 = vmul.f32 1.442695, %v1553_v24 }
 0x259   : > { %1735 = vadd.xlane.f32.xlu0 %v3124_v22  ;;  %v1508_v53 = vpop.xlane.xlu0 %1507  ;;  %v3146_v59 = vpop.eup %2426  ;;  %v1601_v26 = vmul.f32 1.442695, %v1554_v40 }
 0x25a   : > { %v1510_v54 = vpop.xlane.xlu1 %1509  ;;  %v1555_v17 = vsub.f32 %v2910_v29, %v1508_v53  ;;  %v1550_v29 = vsub.f32 %v2881_v20, %v1498_v34  ;;  %v3152_v2 = vpop.eup %2428 }
 0x25b   : > { %v1556_v56 = vsub.f32 %v2913_v30, %v1510_v54  ;;  %v3157_v4 = vpop.eup %2430 }
 0x25c   : > { %v1603_v61 = vmul.f32 1.442695, %v1555_v17  ;;  %v1593_v3 = vmul.f32 1.442695, %v1550_v29 }
 0x25d   : > { %1737 = vadd.xlane.f32.xlu0 %v3128_v46  ;;  %v1605_v62 = vmul.f32 1.442695, %v1556_v56  ;;  %v1512_v18 = vpop.xlane.xlu0 %1511 }
 0x25e   : > { %v1514_v58 = vpop.xlane.xlu1 %1513  ;;  %2432 = vpow2.f32 %v1603_v61  ;;  %v1557_v63 = vsub.f32 %v2918_v31, %v1512_v18 }
 0x25f   : > { %2434 = vpow2.f32 %v1589_v57  ;;  %v1558_v19 = vsub.f32 %v2921_v32, %v1514_v58  ;;  %v1595_v32 = vmul.f32 1.442695, %v1551_v7 }
 0x260   : > { %2436 = vpow2.f32 %v1605_v62  ;;  %v1607_v30 = vmul.f32 1.442695, %v1557_v63 }
 0x261   : > { %1739 = vadd.xlane.f32.xlu0 %v3136_v51  ;;  %v1516_v1 = vpop.xlane.xlu0 %1515  ;;  %2438 = vpow2.f32 %v1591_v0  ;;  %v1609_v8 = vmul.f32 1.442695, %v1558_v19 }
 0x262   : > { %2440 = vpow2.f32 %v1607_v30  ;;  %v1559_v31 = vsub.f32 %v2930_v35, %v1516_v1  ;;  %v1518_v20 = vpop.xlane.xlu1 %1517 }
 0x263   : > { %2442 = vpow2.f32 %v1593_v3  ;;  %v1560_v5 = vsub.f32 %v2933_v36, %v1518_v20 }
 0x264   : > { %2444 = vpow2.f32 %v1609_v8  ;;  %v1611_v16 = vmul.f32 1.442695, %v1559_v31 }
 0x265   : > { %1741 = vadd.xlane.f32.xlu0 %v3140_v55  ;;  %v1520_v21 = vpop.xlane.xlu0 %1519  ;;  %2446 = vpow2.f32 %v1595_v32  ;;  %v1613_v33 = vmul.f32 1.442695, %v1560_v5 }
 0x266   : > { %2448 = vpow2.f32 %v1611_v16  ;;  %v1561_v36 = vsub.f32 %v2938_v37, %v1520_v21  ;;  %v1522_v39 = vpop.xlane.xlu1 %1521 }
 0x267   : > { %2450 = vpow2.f32 %v1597_v28  ;;  %v1562_v49 = vsub.f32 %v2941_v38, %v1522_v39 }
 0x268   : > { %v3160_v6 = vpop.eup %2432  ;;  %2452 = vpow2.f32 %v1613_v33  ;;  %v1615_v45 = vmul.f32 1.442695, %v1561_v36 }
 0x269   : > { %1743 = vadd.xlane.f32.xlu0 %v3146_v59  ;;  %v3163_v23 = vpop.eup %2434  ;;  %1763 = vadd.xlane.f32.xlu1 %v3160_v6  ;;  %v1524_v37 = vpop.xlane.xlu0 %1523  ;;  %2454 = vpow2.f32 %v1599_v12  ;;  %v1617_v15 = vmul.f32 1.442695, %v1562_v49 }
 0x26a   : > { %v3167_v35 = vpop.eup %2436  ;;  %2456 = vpow2.f32 %v1615_v45  ;;  %v1563_v38 = vsub.f32 %v2950_v41, %v1524_v37  ;;  %v1526_v54 = vpop.xlane.xlu1 %1525 }
 0x26b   : > { %v3171_v11 = vpop.eup %2438  ;;  %2458 = vpow2.f32 %v1601_v26  ;;  %v1564_v58 = vsub.f32 %v2953_v42, %v1526_v54 }
 0x26c   : > { %v3176_v34 = vpop.eup %2440  ;;  %2460 = vpow2.f32 %v1617_v15  ;;  %v1619_v41 = vmul.f32 1.442695, %v1563_v38 }
 0x26d   : > { %1745 = vadd.xlane.f32.xlu0 %v3152_v2  ;;  %1765 = vadd.xlane.f32.xlu1 %v3167_v35  ;;  %v3180_v25 = vpop.eup %2442  ;;  %v1528_v29 = vpop.xlane.xlu0 %1527  ;;  %v1621_v8 = vmul.f32 1.442695, %v1564_v58 }
 0x26e   : > { %v3185_v14 = vpop.eup %2444  ;;  %2462 = vpow2.f32 %v1619_v41  ;;  %v1565_v31 = vsub.f32 %v2958_v43, %v1528_v29  ;;  %v1530_v10 = vpop.xlane.xlu1 %1529 }
 0x26f   : > { %v3192_v50 = vpop.eup %2446  ;;  %2464 = vpow2.f32 %v1621_v8  ;;  %v1566_v39 = vsub.f32 %v2961_v44, %v1530_v10 }
 0x270   : > { %v3197_v52 = vpop.eup %2448  ;;  %v1623_v43 = vmul.f32 1.442695, %v1565_v31 }
 0x271   : > { %1747 = vadd.xlane.f32.xlu0 %v3157_v4  ;;  %1767 = vadd.xlane.f32.xlu1 %v3176_v34  ;;  %v3201_v61 = vpop.eup %2450  ;;  %v1532_v45 = vpop.xlane.xlu0 %1531  ;;  %v1625_v54 = vmul.f32 1.442695, %v1566_v39 }
 0x272   : > { %v3207_v63 = vpop.eup %2452  ;;  %2466 = vpow2.f32 %v1623_v43  ;;  %v1567_v44 = vsub.f32 %v2970_v47, %v1532_v45 }
 0x273   : > { %v3213_v20 = vpop.eup %2454  ;;  %2468 = vpow2.f32 %v1625_v54 }
 0x274   : > { %v3215_v16 = vpop.eup %2456  ;;  %v1627_v47 = vmul.f32 1.442695, %v1567_v44 }
 0x275   : > { %1749 = vadd.xlane.f32.xlu0 %v3163_v23  ;;  %1769 = vadd.xlane.f32.xlu1 %v3185_v14  ;;  %v3224_v12 = vpop.eup %2458 }
 0x276   : > { %v3228_v49 = vpop.eup %2460  ;;  %2470 = vpow2.f32 %v1627_v47 }
 0x279   : > { %1751 = vadd.xlane.f32.xlu0 %v3171_v11  ;;  %1771 = vadd.xlane.f32.xlu1 %v3197_v52 }
 0x27d   : > { %1753 = vadd.xlane.f32.xlu0 %v3180_v25  ;;  %1773 = vadd.xlane.f32.xlu1 %v3207_v63 }
 0x281   : > { %1755 = vadd.xlane.f32.xlu0 %v3192_v50  ;;  %1775 = vadd.xlane.f32.xlu1 %v3215_v16 }
 0x285   : > { %1757 = vadd.xlane.f32.xlu0 %v3201_v61  ;;  %1777 = vadd.xlane.f32.xlu1 %v3228_v49 }
 0x289   : > { %1759 = vadd.xlane.f32.xlu0 %v3213_v20 }
 0x28d   : > { %1761 = vadd.xlane.f32.xlu0 %v3224_v12 }
 0x2e8   : > { %v2281_v53 = vpop.f32.mrb[32].mxu1 }
 0x2e9   : > { %v1077_v17 = vadd.f32 %v2281_v53, %v3190_v27  ;;  %v1068_v56 = vpop.f32.mrb[33].mxu1 }
 0x2ea   : > { %v1069_v57 = vadd.f32 %v3190_v27, %v1068_v56  ;;  %v2282_v60 = vpop.f32.mrb[34].mxu1 }
 0x2eb   : > { %v1080_v62 = vadd.f32 %v2282_v60, %v3190_v27  ;;  %v1071_v18 = vpop.f32.mrb[35].mxu1  ;;  %v1197_v30 = vmax.f32 %v1077_v17, 0.0  ;;  %v3233_v60 = vpop.eup %2462 }
 0x2ec   : > { %v1072_v0 = vadd.f32 %v3190_v27, %v1071_v18  ;;  %v1195_v1 = vmax.f32 %v1069_v57, 0.0  ;;  %v1534_v57 = vpop.xlane.xlu1 %1533  ;;  %1779 = vadd.xlane.f32.xlu1 %v3233_v60 }
 0x2ed   : > { %v1198_v19 = vmax.f32 %v1080_v62, 0.0 }
 0x2ee   : > { %v1196_v3 = vmax.f32 %v1072_v0, 0.0 }
 0x2ef   : > { %v1228_v7 = vpack.c.bf16 %v1198_v19, %v1197_v30  ;;  %v1568_v30 = vsub.f32 %v2973_v48, %v1534_v57 }
 0x2f0   : > { %v1227_v42 = vpack.c.bf16 %v1196_v3, %v1195_v1  ;;  %v2285_v32 = vpop.f32.mrb[36].mxu1  ;;  %v1536_v1 = vpop.xlane.xlu0 %1535 }
 0x2f1   : > { %v1093_v5 = vadd.f32 %v2285_v32, %v3190_v27  ;;  %v1084_v21 = vpop.f32.mrb[37].mxu1  ;;  %v3243_v3 = vpop.eup %2464  ;;  %v1629_v10 = vmul.f32 1.442695, %v1568_v30 }
 0x2f2   : > { %v1085_v28 = vadd.f32 %v3190_v27, %v1084_v21  ;;  %v2286_v24 = vpop.f32.mrb[38].mxu1  ;;  %2315 = vmatprep.mubr.msk.bf16.mxu0 %vm705_vm0, %v1227_v42  ;;  %1781 = vadd.xlane.f32.xlu1 %v3243_v3  ;;  %v1538_v48 = vpop.xlane.xlu1 %1537 }
 0x2f3   : > { %v1096_v33 = vadd.f32 %v2286_v24, %v3190_v27  ;;  %v1087_v36 = vpop.f32.mrb[39].mxu1  ;;  %2316 = vmatmul.mubr.msk.bf16.vlgmr.msra.gmra.mrb[32].mxu0 %vm705_vm0, %v1228_v7  ;;  %v1201_v37 = vmax.f32 %v1093_v5, 0.0  ;;  %v2542_v5 = vld [vmem:[%s2805_s19 + $0xf0] sm:$0xff]  ;;  %2472 = vpow2.f32 %v1629_v10 }
 0x2f4   : > { %v1088_v40 = vadd.f32 %v3190_v27, %v1087_v36  ;;  %v1199_v15 = vmax.f32 %v1085_v28, 0.0  ;;  %v1569_v21 = vsub.f32 %v2542_v5, %v1536_v1 }
 0x2f5   : > { %v1202_v26 = vmax.f32 %v1096_v33, 0.0  ;;  %v3247_v33 = vpop.eup %2466 }
 0x2f6   : > { %v1200_v38 = vmax.f32 %v1088_v40, 0.0  ;;  %1783 = vadd.xlane.f32.xlu1 %v3247_v33  ;;  %v3257_v54 = vpop.eup %2468 }
 0x2f7   : > { %v1230_v53 = vpack.c.bf16 %v1202_v26, %v1201_v37  ;;  %v1631_v26 = vmul.f32 1.442695, %v1569_v21 }
 0x2f8   : > { %v1229_v17 = vpack.c.bf16 %v1200_v38, %v1199_v15  ;;  %v2289_v56 = vpop.f32.mrb[40].mxu1  ;;  %v2543_v15 = vld [vmem:[%s2805_s19 + $0xf8] sm:$0xff]  ;;  %s2578_s19 = sshll.u32 %s2646_s13, 4  ;;  %s2579_s19 = int_to_ptr.vmem [resolvable:$false] %s2578_s19 }
 0x2f9   : > { %v1109_v62 = vadd.f32 %v2289_v56, %v3190_v27  ;;  %v1100_v18 = vpop.f32.mrb[41].mxu1  ;;  %v1570_v38 = vsub.f32 %v2543_v15, %v1538_v48  ;;  %2474 = vpow2.f32 %v1631_v26  ;;  %s2580_s27 = scalar_lea.vmem %s2579_s19, 64  ;;  %p2581_p8 = scmp.lt.s32.totalorder %s3443_s23, %s2579_s19 }
 0x2fa   : > { %v1101_v41 = vadd.f32 %v3190_v27, %v1100_v18  ;;  %v2290_v58 = vpop.f32.mrb[42].mxu1  ;;  %2319 = vmatprep.mubr.msk.bf16.mxu0 %vm705_vm0, %v1229_v17  ;;  %1785 = vadd.xlane.f32.xlu1 %v3257_v54  ;;  %p2582_p10 = scmp.lt.s32.totalorder %s2580_s27, %s2574_s17 }
 0x2fb   : > { %v1112_v0 = vadd.f32 %v2290_v58, %v3190_v27  ;;  %v1103_v29 = vpop.f32.mrb[43].mxu1  ;;  %2320 = vmatmul.mubr.msk.bf16.gmra.mrb[36].mxu0 %vm705_vm0, %v1230_v53  ;;  %v1205_v7 = vmax.f32 %v1109_v62, 0.0  ;;  %v1633_v18 = vmul.f32 1.442695, %v1570_v38 }
 0x2fc   : > { %v1104_v19 = vadd.f32 %v3190_v27, %v1103_v29  ;;  %v1203_v31 = vmax.f32 %v1101_v41, 0.0  ;;  %p2583_p0 = por %p2582_p10, %p2581_p8 }
 0x2fd   : > { %v1206_v8 = vmax.f32 %v1112_v0, 0.0  ;;  %v3260_v0 = vpop.eup %2470  ;;  %2476 = vpow2.f32 %v1633_v18 }
 0x2fe   : > { %v1204_v42 = vmax.f32 %v1104_v19, 0.0  ;;  %1787 = vadd.xlane.f32.xlu1 %v3260_v0  ;;  %p2584_p2 = pnand %p2583_p0, %p2577_p13 }
 0x2ff   : > { %v1232_v32 = vpack.c.bf16 %v1206_v8, %v1205_v7 }
 0x300   : > { %v1231_v28 = vpack.c.bf16 %v1204_v42, %v1203_v31  ;;  %v2293_v24 = vpop.f32.mrb[44].mxu1  ;;  %v3269_v31 = vpop.eup %2472 }
 0x301   : > { %v1125_v36 = vadd.f32 %v2293_v24, %v3190_v27  ;;  %v1116_v43 = vpop.f32.mrb[45].mxu1 }
 0x302   : > { %v1117_v39 = vadd.f32 %v3190_v27, %v1116_v43  ;;  %v2294_v40 = vpop.f32.mrb[46].mxu1  ;;  %2323 = vmatprep.mubr.msk.bf16.mxu0 %vm705_vm0, %v1231_v28  ;;  %1789 = vadd.xlane.f32.xlu1 %v3269_v31 }
 0x303   : > { %v1128_v45 = vadd.f32 %v2294_v40, %v3190_v27  ;;  %v1119_v37 = vpop.f32.mrb[47].mxu1  ;;  %2324 = vmatmul.mubr.msk.bf16.gmra.mrb[40].mxu0 %vm705_vm0, %v1232_v32  ;;  %v1209_v44 = vmax.f32 %v1125_v36, 0.0  ;;  %v3272_v48 = vpop.eup %2474 }
 0x304   : > { %v1120_v53 = vadd.f32 %v3190_v27, %v1119_v37  ;;  %v1207_v56 = vmax.f32 %v1117_v39, 0.0 }
 0x305   : > { %v1210_v17 = vmax.f32 %v1128_v45, 0.0 }
 0x306   : > { %v1208_v57 = vmax.f32 %v1120_v53, 0.0  ;;  %1791 = vadd.xlane.f32.xlu1 %v3272_v48 }
 0x307   : > { %v1234_v62 = vpack.c.bf16 %v1210_v17, %v1209_v44  ;;  %v3281_v15 = vpop.eup %2476 }
 0x308   : > { %v1233_v41 = vpack.c.bf16 %v1208_v57, %v1207_v56  ;;  %v2297_v58 = vpop.f32.mrb[48].mxu1 }
 0x309   : > { %v1141_v29 = vadd.f32 %v2297_v58, %v3190_v27  ;;  %v1132_v47 = vpop.f32.mrb[49].mxu1 }
 0x30a   : > { %v1133_v30 = vadd.f32 %v3190_v27, %v1132_v47  ;;  %v2298_v19 = vpop.f32.mrb[50].mxu1  ;;  %2327 = vmatprep.mubr.msk.bf16.mxu0 %vm705_vm0, %v1233_v41  ;;  %1793 = vadd.xlane.f32.xlu1 %v3281_v15 }
 0x30b   : > { %v1144_v1 = vadd.f32 %v2298_v19, %v3190_v27  ;;  %v1135_v7 = vpop.f32.mrb[51].mxu1  ;;  %2328 = vmatmul.mubr.msk.bf16.gmra.mrb[44].mxu0 %vm705_vm0, %v1234_v62  ;;  %v1213_v42 = vmax.f32 %v1141_v29, 0.0 }
 0x30c   : > { %v1136_v8 = vadd.f32 %v3190_v27, %v1135_v7  ;;  %v1211_v10 = vmax.f32 %v1133_v30, 0.0 }
 0x30d   : > { %v1214_v32 = vmax.f32 %v1144_v1, 0.0 }
 0x30e   : > { %v1212_v5 = vmax.f32 %v1136_v8, 0.0 }
 0x30f   : > { %v1236_v21 = vpack.c.bf16 %v1214_v32, %v1213_v42 }
 0x310   : > { %v1235_v28 = vpack.c.bf16 %v1212_v5, %v1211_v10  ;;  %v2301_v24 = vpop.f32.mrb[52].mxu1 }
 0x311   : > { %v1157_v36 = vadd.f32 %v2301_v24, %v3190_v27  ;;  %v1148_v43 = vpop.f32.mrb[53].mxu1 }
 0x312   : > { %v1149_v39 = vadd.f32 %v3190_v27, %v1148_v43  ;;  %v2302_v40 = vpop.f32.mrb[54].mxu1  ;;  %2331 = vmatprep.mubr.msk.bf16.mxu0 %vm705_vm0, %v1235_v28 }
 0x313   : > { %v1160_v45 = vadd.f32 %v2302_v40, %v3190_v27  ;;  %v1151_v37 = vpop.f32.mrb[55].mxu1  ;;  %2332 = vmatmul.mubr.msk.bf16.gmra.mrb[48].mxu0 %vm705_vm0, %v1236_v21  ;;  %v1217_v38 = vmax.f32 %v1157_v36, 0.0 }
 0x314   : > { %v1152_v26 = vadd.f32 %v3190_v27, %v1151_v37  ;;  %v1215_v44 = vmax.f32 %v1149_v39, 0.0 }
 0x315   : > { %v1218_v53 = vmax.f32 %v1160_v45, 0.0 }
 0x316   : > { %v1216_v17 = vmax.f32 %v1152_v26, 0.0 }
 0x317   : > { %v1238_v56 = vpack.c.bf16 %v1218_v53, %v1217_v38 }
 0x318   : > { %v1237_v57 = vpack.c.bf16 %v1216_v17, %v1215_v44  ;;  %v2305_v62 = vpop.f32.mrb[56].mxu1  ;;  %v3301_v17 = vld [vmem:[%s3493_s8] ss:$0 sm:$0xff] }
 0x319   : > { %v1173_v18 = vadd.f32 %v2305_v62, %v3190_v27  ;;  %v1164_v41 = vpop.f32.mrb[57].mxu1 }
 0x31a   : > { %v1165_v58 = vadd.f32 %v3190_v27, %v1164_v41  ;;  %v2306_v29 = vpop.f32.mrb[58].mxu1  ;;  %2335 = vmatprep.mubr.msk.bf16.mxu0 %vm705_vm0, %v1237_v57 }
 0x31b   : > { %v1221_v47 = vmax.f32 %v1173_v18, 0.0  ;;  %v1176_v30 = vadd.f32 %v2306_v29, %v3190_v27  ;;  %v1167_v19 = vpop.f32.mrb[59].mxu1  ;;  %2336 = vmatmul.mubr.msk.bf16.gmra.mrb[52].mxu0 %vm705_vm0, %v1238_v56 }
 0x31c   : > { %v1219_v1 = vmax.f32 %v1165_v58, 0.0  ;;  %v1168_v7 = vadd.f32 %v3190_v27, %v1167_v19 }
 0x31d   : > { %v1222_v8 = vmax.f32 %v1176_v30, 0.0 }
 0x31e   : > { %v1220_v42 = vmax.f32 %v1168_v7, 0.0 }
 0x31f   : > { %v1240_v32 = vpack.c.bf16 %v1222_v8, %v1221_v47 }
 0x320   : > { %v1239_v10 = vpack.c.bf16 %v1220_v42, %v1219_v1  ;;  %v2309_v5 = vpop.f32.mrb[60].mxu1 }
 0x321   : > { %v1189_v21 = vadd.f32 %v2309_v5, %v3190_v27  ;;  %v1180_v28 = vpop.f32.mrb[61].mxu1 }
 0x322   : > { %v1181_v24 = vadd.f32 %v3190_v27, %v1180_v28  ;;  %v2310_v36 = vpop.f32.mrb[62].mxu1  ;;  %2339 = vmatprep.mubr.msk.bf16.mxu0 %vm705_vm0, %v1239_v10 }
 0x323   : > { %v1225_v43 = vmax.f32 %v1189_v21, 0.0  ;;  %v1192_v39 = vadd.f32 %v2310_v36, %v3190_v27  ;;  %v1183_v40 = vpop.f32.mrb[63].mxu1  ;;  %2340 = vmatmul.mubr.msk.bf16.gmra.mrb[56].mxu0 %vm705_vm0, %v1240_v32 }
 0x324   : > { %v1223_v45 = vmax.f32 %v1181_v24, 0.0  ;;  %v1184_v37 = vadd.f32 %v3190_v27, %v1183_v40 }
 0x325   : > { %v1226_v26 = vmax.f32 %v1192_v39, 0.0 }
 0x326   : > { %v1224_v38 = vmax.f32 %v1184_v37, 0.0 }
 0x327   : > { %v1242_v53 = vpack.c.bf16 %v1226_v26, %v1225_v43 }
 0x328   : > { %v1241_v44 = vpack.c.bf16 %v1224_v38, %v1223_v45 }
 0x32a   : > { %2343 = vmatprep.mubr.msk.bf16.mxu1 %vm705_vm0, %v1241_v44 }
 0x32b   : > { %2344 = vmatmul.mubr.msk.bf16.vlgmr.msra.gmra.mrb[64].mxu1 %vm705_vm0, %v1242_v53 }
 0x3c6   : > { %v2317_v56 = vpop.f32.mrb[32].mxu0 }
 0x3c7   : > { %v1357_v57 = vadd.f32 %v2317_v56, %v3301_v17  ;;  %v1348_v62 = vpop.f32.mrb[33].mxu0 }
 0x3c8   : > { %v2318_v18 = vpop.f32.mrb[34].mxu0  ;;  %v1349_v27 = vadd.f32 %v3301_v17, %v1348_v62 }
 0x3c9   : > { %v1360_v41 = vadd.f32 %v2318_v18, %v3301_v17  ;;  %v1351_v58 = vpop.f32.mrb[35].mxu0  ;;  %v1637_v29 = vmul.f32 %v3124_v22, %v1357_v57 }
 0x3ca   : > { %v1352_v47 = vadd.f32 %v3301_v17, %v1351_v58  ;;  %v1635_v19 = vmul.f32 %v3116_v13, %v1349_v27 }
 0x3cb   : > { %1671 = vadd.xlane.f32.xlu0 %v1637_v29  ;;  %v1638_v30 = vmul.f32 %v3128_v46, %v1360_v41 }
 0x3cc   : > { %v1636_v42 = vmul.f32 %v3120_v9, %v1352_v47 }
 0x3cd   : > { %1673 = vadd.xlane.f32.xlu1 %v1638_v30 }
 0x3ce   : > { %v2321_v1 = vpop.f32.mrb[36].mxu0 }
 0x3cf   : > { %v1373_v7 = vadd.f32 %v2321_v1, %v3301_v17  ;;  %v1364_v8 = vpop.f32.mrb[37].mxu0  ;;  %1667 = vadd.xlane.f32.xlu0 %v1635_v19 }
 0x3d0   : > { %v2322_v32 = vpop.f32.mrb[38].mxu0  ;;  %v1365_v10 = vadd.f32 %v3301_v17, %v1364_v8 }
 0x3d1   : > { %v1376_v22 = vadd.f32 %v2322_v32, %v3301_v17  ;;  %v1367_v5 = vpop.f32.mrb[39].mxu0  ;;  %1669 = vadd.xlane.f32.xlu1 %v1636_v42  ;;  %v1641_v21 = vmul.f32 %v3146_v59, %v1373_v7 }
 0x3d2   : > { %v1368_v46 = vadd.f32 %v3301_v17, %v1367_v5  ;;  %v1639_v28 = vmul.f32 %v3136_v51, %v1365_v10 }
 0x3d3   : > { %1679 = vadd.xlane.f32.xlu0 %v1641_v21  ;;  %v1642_v13 = vmul.f32 %v3152_v2, %v1376_v22 }
 0x3d4   : > { %v1640_v43 = vmul.f32 %v3140_v55, %v1368_v46 }
 0x3d5   : > { %1681 = vadd.xlane.f32.xlu1 %v1642_v13 }
 0x3d6   : > { %v2325_v24 = vpop.f32.mrb[40].mxu0 }
 0x3d7   : > { %v1389_v9 = vadd.f32 %v2325_v24, %v3301_v17  ;;  %v1380_v36 = vpop.f32.mrb[41].mxu0  ;;  %1675 = vadd.xlane.f32.xlu0 %v1639_v28 }
 0x3d8   : > { %v2326_v39 = vpop.f32.mrb[42].mxu0  ;;  %v1381_v40 = vadd.f32 %v3301_v17, %v1380_v36  ;;  %v1732_v36 = vpop.xlane.xlu0 %1731 }
 0x3d9   : > { %v1392_v59 = vadd.f32 %v2326_v39, %v3301_v17  ;;  %v1383_v45 = vpop.f32.mrb[43].mxu0  ;;  %1677 = vadd.xlane.f32.xlu1 %v1640_v43  ;;  %v1645_v37 = vmul.f32 %v3171_v11, %v1389_v9  ;;  %2478 = vrcp.f32 %v1732_v36 }
 0x3da   : > { %v1384_v2 = vadd.f32 %v3301_v17, %v1383_v45  ;;  %v1643_v26 = vmul.f32 %v3157_v4, %v1381_v40  ;;  %v3355_v40 = vpop.xlane.xlu1 %1763 }
 0x3db   : > { %1687 = vadd.xlane.f32.xlu0 %v1645_v37  ;;  %v1646_v51 = vmul.f32 %v3180_v25, %v1392_v59 }
 0x3dc   : > { %v1644_v44 = vmul.f32 %v3163_v23, %v1384_v2  ;;  %v1734_v37 = vpop.xlane.xlu0 %1733 }
 0x3dd   : > { %1689 = vadd.xlane.f32.xlu1 %v1646_v51  ;;  %2480 = vrcp.f32 %v1734_v37 }
 0x3de   : > { %v2329_v38 = vpop.f32.mrb[44].mxu0 }
 0x3df   : > { %v1405_v55 = vadd.f32 %v2329_v38, %v3301_v17  ;;  %v1396_v53 = vpop.f32.mrb[45].mxu0  ;;  %1683 = vadd.xlane.f32.xlu0 %v1643_v26 }
 0x3e0   : > { %v2330_v56 = vpop.f32.mrb[46].mxu0  ;;  %v1397_v57 = vadd.f32 %v3301_v17, %v1396_v53 }
 0x3e1   : > { %v1408_v11 = vadd.f32 %v2330_v56, %v3301_v17  ;;  %v1399_v62 = vpop.f32.mrb[47].mxu0  ;;  %1685 = vadd.xlane.f32.xlu1 %v1644_v44  ;;  %v1649_v18 = vmul.f32 %v3213_v20, %v1405_v55 }
 0x3e2   : > { %v1400_v25 = vadd.f32 %v3301_v17, %v1399_v62  ;;  %v1647_v27 = vmul.f32 %v3192_v50, %v1397_v57 }
 0x3e3   : > { %1695 = vadd.xlane.f32.xlu0 %v1649_v18  ;;  %v1650_v4 = vmul.f32 %v3224_v12, %v1408_v11 }
 0x3e4   : > { %v1648_v29 = vmul.f32 %v3201_v61, %v1400_v25 }
 0x3e5   : > { %1697 = vadd.xlane.f32.xlu1 %v1650_v4 }
 0x3e6   : > { %v2333_v41 = vpop.f32.mrb[48].mxu0 }
 0x3e7   : > { %v1421_v23 = vadd.f32 %v2333_v41, %v3301_v17  ;;  %v1412_v58 = vpop.f32.mrb[49].mxu0  ;;  %1691 = vadd.xlane.f32.xlu0 %v1647_v27 }
 0x3e8   : > { %v2334_v47 = vpop.f32.mrb[50].mxu0  ;;  %v1413_v30 = vadd.f32 %v3301_v17, %v1412_v58 }
 0x3e9   : > { %v1424_v20 = vadd.f32 %v2334_v47, %v3301_v17  ;;  %v1415_v19 = vpop.f32.mrb[51].mxu0  ;;  %1693 = vadd.xlane.f32.xlu1 %v1648_v29  ;;  %v1653_v1 = vmul.f32 %v3176_v34, %v1421_v23 }
 0x3ea   : > { %v1416_v12 = vadd.f32 %v3301_v17, %v1415_v19  ;;  %v1651_v7 = vmul.f32 %v3160_v6, %v1413_v30 }
 0x3eb   : > { %1703 = vadd.xlane.f32.xlu0 %v1653_v1  ;;  %v1654_v50 = vmul.f32 %v3185_v14, %v1424_v20 }
 0x3ec   : > { %v1652_v32 = vmul.f32 %v3167_v35, %v1416_v12 }
 0x3ed   : > { %1705 = vadd.xlane.f32.xlu1 %v1654_v50 }
 0x3ee   : > { %v2337_v8 = vpop.f32.mrb[52].mxu0 }
 0x3ef   : > { %v1437_v61 = vadd.f32 %v2337_v8, %v3301_v17  ;;  %v1428_v42 = vpop.f32.mrb[53].mxu0  ;;  %1699 = vadd.xlane.f32.xlu0 %v1651_v7 }
 0x3f0   : > { %v2338_v10 = vpop.f32.mrb[54].mxu0  ;;  %v1429_v22 = vadd.f32 %v3301_v17, %v1428_v42 }
 0x3f1   : > { %v1440_v34 = vadd.f32 %v2338_v10, %v3301_v17  ;;  %v1431_v5 = vpop.f32.mrb[55].mxu0  ;;  %1701 = vadd.xlane.f32.xlu1 %v1652_v32  ;;  %v1657_v21 = vmul.f32 %v3215_v16, %v1437_v61 }
 0x3f2   : > { %v1432_v14 = vadd.f32 %v3301_v17, %v1431_v5  ;;  %v1655_v46 = vmul.f32 %v3197_v52, %v1429_v22  ;;  %v2479_v5 = vpop.eup %2478 }
 0x3f3   : > { %1711 = vadd.xlane.f32.xlu0 %v1657_v21  ;;  %v1658_v6 = vmul.f32 %v3228_v49, %v1440_v34 }
 0x3f4   : > { %v1656_v24 = vmul.f32 %v3207_v63, %v1432_v14 }
 0x3f5   : > { %1713 = vadd.xlane.f32.xlu1 %v1658_v6 }
 0x3f6   : > { %v2341_v13 = vpop.f32.mrb[56].mxu0 }
 0x3f7   : > { %v1453_v35 = vadd.f32 %v2341_v13, %v3301_v17  ;;  %v1444_v28 = vpop.f32.mrb[57].mxu0  ;;  %1707 = vadd.xlane.f32.xlu0 %v1655_v46  ;;  %v2481_v46 = vpop.eup %2480 }
 0x3f8   : > { %v2342_v9 = vpop.f32.mrb[58].mxu0  ;;  %v1445_v43 = vadd.f32 %v3301_v17, %v1444_v28 }
 0x3f9   : > { %v1456_v16 = vadd.f32 %v2342_v9, %v3301_v17  ;;  %v1447_v39 = vpop.f32.mrb[59].mxu0  ;;  %1709 = vadd.xlane.f32.xlu1 %v1656_v24  ;;  %v1661_v49 = vmul.f32 %v3247_v33, %v1453_v35  ;;  %v3362_v33 = vpop.xlane.xlu1 %1765 }
 0x3fa   : > { %v1448_v52 = vadd.f32 %v3301_v17, %v1447_v39  ;;  %v1659_v63 = vmul.f32 %v3233_v60, %v1445_v43 }
 0x3fb   : > { %1719 = vadd.xlane.f32.xlu0 %v1661_v49  ;;  %v1662_v59 = vmul.f32 %v3257_v54, %v1456_v16 }
 0x3fc   : > { %v1660_v26 = vmul.f32 %v3243_v3, %v1448_v52  ;;  %v1736_v3 = vpop.xlane.xlu0 %1735 }
 0x3fd   : > { %1721 = vadd.xlane.f32.xlu1 %v1662_v59  ;;  %v3370_v11 = vpop.xlane.xlu1 %1767  ;;  %2482 = vrcp.f32 %v1736_v3 }
 0x3fe   : > { %v2345_v45 = vpop.f32.mrb[64].mxu1 }
 0x3ff   : > { %v1469_v2 = vadd.f32 %v2345_v45, %v3301_v17  ;;  %v1460_v51 = vpop.f32.mrb[65].mxu1  ;;  %1715 = vadd.xlane.f32.xlu0 %v1659_v63 }
 0x400   : > { %v2346_v38 = vpop.f32.mrb[66].mxu1  ;;  %v1461_v55 = vadd.f32 %v3301_v17, %v1460_v51  ;;  %v1738_v18 = vpop.xlane.xlu0 %1737 }
 0x401   : > { %v1472_v53 = vadd.f32 %v2346_v38, %v3301_v17  ;;  %v1463_v44 = vpop.f32.mrb[67].mxu1  ;;  %1717 = vadd.xlane.f32.xlu1 %v1660_v26  ;;  %v1665_v54 = vmul.f32 %v3272_v48, %v1469_v2  ;;  %v3373_v25 = vpop.xlane.xlu1 %1769  ;;  %2484 = vrcp.f32 %v1738_v18 }
 0x402   : > { %v1464_v60 = vadd.f32 %v3301_v17, %v1463_v44  ;;  %v1663_v57 = vmul.f32 %v3260_v0, %v1461_v55 }
 0x403   : > { %1727 = vadd.xlane.f32.xlu0 %v1665_v54  ;;  %v1666_v56 = vmul.f32 %v3281_v15, %v1472_v53 }
 0x404   : > { %v1664_v62 = vmul.f32 %v3269_v31, %v1464_v60  ;;  %v1740_v4 = vpop.xlane.xlu0 %1739 }
 0x405   : > { %1729 = vadd.xlane.f32.xlu1 %v1666_v56  ;;  %v3375_v48 = vpop.xlane.xlu1 %1771  ;;  %2486 = vrcp.f32 %v1740_v4 }
 0x407   : > { %1723 = vadd.xlane.f32.xlu0 %v1663_v57  ;;  %v2483_v24 = vpop.eup %2482 }
 0x408   : > { %v1742_v17 = vpop.xlane.xlu0 %1741 }
 0x409   : > { %1725 = vadd.xlane.f32.xlu1 %v1664_v62  ;;  %v3377_v27 = vpop.xlane.xlu1 %1773  ;;  %2488 = vrcp.f32 %v1742_v17 }
 0x40b   : > { %v2485_v16 = vpop.eup %2484 }
 0x40c   : > { %v1744_v15 = vpop.xlane.xlu0 %1743 }
 0x40d   : > { %v3379_v41 = vpop.xlane.xlu1 %1775  ;;  %2490 = vrcp.f32 %v1744_v15 }
 0x40f   : > { %v2487_v59 = vpop.eup %2486 }
 0x410   : > { %v1746_v0 = vpop.xlane.xlu0 %1745 }
 0x411   : > { %v3381_v23 = vpop.xlane.xlu1 %1777  ;;  %2492 = vrcp.f32 %v1746_v0 }
 0x413   : > { %v2489_v2 = vpop.eup %2488 }
 0x414   : > { %v1748_v58 = vpop.xlane.xlu0 %1747 }
 0x415   : > { %v3383_v29 = vpop.xlane.xlu1 %1779  ;;  %2494 = vrcp.f32 %v1748_v58 }
 0x416   : > { %2496 = vrcp.f32 %v3355_v40 }
 0x417   : > { %v2491_v55 = vpop.eup %2490 }
 0x418   : > { %v1750_v31 = vpop.xlane.xlu0 %1749 }
 0x419   : > { %v3385_v47 = vpop.xlane.xlu1 %1781  ;;  %2498 = vrcp.f32 %v1750_v31 }
 0x41a   : > { %2500 = vrcp.f32 %v3362_v33 }
 0x41b   : > { %v2493_v60 = vpop.eup %2492 }
 0x41c   : > { %v1752_v30 = vpop.xlane.xlu0 %1751 }
 0x41d   : > { %v3387_v20 = vpop.xlane.xlu1 %1783  ;;  %2502 = vrcp.f32 %v1752_v30 }
 0x41e   : > { %2504 = vrcp.f32 %v3370_v11 }
 0x41f   : > { %v2495_v62 = vpop.eup %2494 }
 0x420   : > { %v3389_v19 = vpop.xlane.xlu0 %1753  ;;  %v2497_v40 = vpop.eup %2496 }
 0x421   : > { %v3391_v1 = vpop.xlane.xlu1 %1785  ;;  %2506 = vrcp.f32 %v3389_v19 }
 0x422   : > { %2508 = vrcp.f32 %v3373_v25 }
 0x423   : > { %v2499_v15 = vpop.eup %2498 }
 0x424   : > { %v3393_v12 = vpop.xlane.xlu0 %1755  ;;  %v2501_v0 = vpop.eup %2500 }
 0x425   : > { %v3395_v50 = vpop.xlane.xlu1 %1787  ;;  %2510 = vrcp.f32 %v3393_v12 }
 0x426   : > { %2512 = vrcp.f32 %v3375_v48 }
 0x427   : > { %v2503_v31 = vpop.eup %2502 }
 0x428   : > { %v3397_v7 = vpop.xlane.xlu0 %1757  ;;  %v2505_v30 = vpop.eup %2504 }
 0x429   : > { %v3399_v8 = vpop.xlane.xlu1 %1789  ;;  %2514 = vrcp.f32 %v3397_v7 }
 0x42a   : > { %2516 = vrcp.f32 %v3377_v27 }
 0x42c   : > { %v3401_v61 = vpop.xlane.xlu0 %1759 }
 0x42d   : > { %v3403_v42 = vpop.xlane.xlu1 %1791  ;;  %2518 = vrcp.f32 %v3401_v61 }
 0x42e   : > { %2520 = vrcp.f32 %v3379_v41 }
 0x430   : > { %v3405_v32 = vpop.xlane.xlu0 %1761 }
 0x431   : > { %v3407_v10 = vpop.xlane.xlu1 %1793  ;;  %2522 = vrcp.f32 %v3405_v32 }
 0x432   : > { %2524 = vrcp.f32 %v3381_v23 }
 0x433   : > { %2526 = vrcp.f32 %v3383_v29 }
 0x434   : > { %2528 = vrcp.f32 %v3385_v47 }
 0x435   : > { %2530 = vrcp.f32 %v3387_v20 }
 0x436   : > { %2532 = vrcp.f32 %v3391_v1 }
 0x437   : > { %2534 = vrcp.f32 %v3395_v50 }
 0x438   : > { %2536 = vrcp.f32 %v3399_v8 }
 0x458   : > { %v1672_v22 = vpop.xlane.xlu0 %1671 }
 0x459   : > { %v1800_v36 = vmul.f32 %v2483_v24, %v1672_v22 }
 0x45a   : > { %v1674_v34 = vpop.xlane.xlu1 %1673 }
 0x45b   : > { %v1802_v49 = vmul.f32 %v2485_v16, %v1674_v34  ;;  %v2507_v34 = vpop.eup %2506  ;;  %2538 = vrcp.f32 %v3403_v42  ;;  %v2645_v42 = vmov 1966171168  }
 0x45c   : > { %v1668_v21 = vpop.xlane.xlu0 %1667 }
 0x45d   : > { %v1796_v14 = vmul.f32 %v2479_v5, %v1668_v21  ;;  %v2509_v5 = vpop.eup %2508  ;;  %2540 = vrcp.f32 %v3407_v10 }
 0x45e   : > { %v1670_v6 = vpop.xlane.xlu1 %1669 }
 0x45f   : > { %1859 = vxpose.xlu0.b32.start [1/16] (narrow) %v1796_v14, 8  ;;  %v1798_v35 = vmul.f32 %v2481_v46, %v1670_v6  ;;  %v2511_v6 = vpop.eup %2510 }
 0x460   : > { %v1680_v13 = vpop.xlane.xlu0 %1679  ;;  %v2513_v7 = vpop.eup %2512 }
 0x461   : > { %v1808_v44 = vmul.f32 %v2491_v55, %v1680_v13 }
 0x462   : > { %v1682_v28 = vpop.xlane.xlu1 %1681 }
 0x463   : > { %1860 = vxpose.xlu0.b32.cont [2/16] (narrow) %v1798_v35, 8  ;;  %v1810_v57 = vmul.f32 %v2493_v60, %v1682_v28  ;;  %v2515_v35 = vpop.eup %2514 }
 0x464   : > { %v1676_v9 = vpop.xlane.xlu0 %1675  ;;  %v2517_v61 = vpop.eup %2516 }
 0x465   : > { %v1804_v45 = vmul.f32 %v2487_v59, %v1676_v9  ;;  %v2519_v41 = vpop.eup %2518 }
 0x466   : > { %v1678_v43 = vpop.xlane.xlu1 %1677  ;;  %v2521_v9 = vpop.eup %2520 }
 0x467   : > { %1861 = vxpose.xlu0.b32.cont [3/16] (narrow) %v1800_v36, 8  ;;  %v1806_v26 = vmul.f32 %v2489_v2, %v1678_v43  ;;  %v2523_v23 = vpop.eup %2522 }
 0x468   : > { %v1688_v39 = vpop.xlane.xlu0 %1687  ;;  %v2525_v16 = vpop.eup %2524 }
 0x469   : > { %v1816_v22 = vmul.f32 %v2503_v31, %v1688_v39  ;;  %v2527_v59 = vpop.eup %2526 }
 0x46a   : > { %v1690_v52 = vpop.xlane.xlu1 %1689  ;;  %v2529_v47 = vpop.eup %2528 }
 0x46b   : > { %1862 = vxpose.xlu0.b32.cont [4/16] (narrow) %v1802_v49, 8  ;;  %v1818_v21 = vmul.f32 %v2507_v34, %v1690_v52  ;;  %v2531_v2 = vpop.eup %2530 }
 0x46c   : > { %v1684_v63 = vpop.xlane.xlu0 %1683  ;;  %v2533_v20 = vpop.eup %2532 }
 0x46d   : > { %v1812_v4 = vmul.f32 %v2495_v62, %v1684_v63  ;;  %v2535_v1 = vpop.eup %2534  ;;  %v1927_v62 = vunpack.c.l.s4 %v2645_v42 }
 0x46e   : > { %v1686_v37 = vpop.xlane.xlu1 %1685  ;;  %v2537_v50 = vpop.eup %2536 }
 0x46f   : > { %1863 = vxpose.xlu0.b32.cont [5/16] (narrow) %v1804_v45, 8  ;;  %v1814_v58 = vmul.f32 %v2499_v15, %v1686_v37 }
 0x470   : > { %v3409_v51 = vpop.xlane.xlu0 %1695 }
 0x471   : > { %v1824_v32 = vmul.f32 %v2519_v41, %v3409_v51 }
 0x472   : > { %v3412_v38 = vpop.xlane.xlu1 %1697 }
 0x473   : > { %1864 = vxpose.xlu0.b32.cont [6/16] (narrow) %v1806_v26, 8  ;;  %v1826_v49 = vmul.f32 %v2523_v23, %v3412_v38 }
 0x474   : > { %v1692_v53 = vpop.xlane.xlu0 %1691 }
 0x475   : > { %v1820_v46 = vmul.f32 %v2511_v6, %v1692_v53 }
 0x476   : > { %v1694_v54 = vpop.xlane.xlu1 %1693 }
 0x477   : > { %1865 = vxpose.xlu0.b32.cont [7/16] (narrow) %v1808_v44, 8  ;;  %v1822_v28 = vmul.f32 %v2515_v35, %v1694_v54 }
 0x478   : > { %v1704_v56 = vpop.xlane.xlu0 %1703 }
 0x479   : > { %v1832_v25 = vmul.f32 %v2505_v30, %v1704_v56  ;;  %v2539_v56 = vpop.eup %2538 }
 0x47a   : > { %v1706_v3 = vpop.xlane.xlu1 %1705 }
 0x47b   : > { %1866 = vxpose.xlu0.b32.cont [8/16] (narrow) %v1810_v57, 8  ;;  %v1834_v48 = vmul.f32 %v2509_v5, %v1706_v3  ;;  %v2541_v57 = vpop.eup %2540 }
 0x47c   : > { %v1700_v18 = vpop.xlane.xlu0 %1699 }
 0x47d   : > { %v1828_v17 = vmul.f32 %v2497_v40, %v1700_v18  ;;  %v1929_v40 = vlaneseq  ;;  %v1928_v18 = vunpack.c.0.s8 %v1927_v62 }
 0x47e   : > { %v1702_v33 = vpop.xlane.xlu1 %1701 }
 0x47f   : > { %1867 = vxpose.xlu0.b32.cont [9/16] (narrow) %v1812_v4, 8  ;;  %1891 = vxpose.xlu1.b32.start [1/16] (narrow) %v1828_v17, 8  ;;  %v1830_v11 = vmul.f32 %v2501_v0, %v1702_v33  ;;  %v1930_v4 = vshrl.u32 %v1929_v40, 7  ;;  %vm1943_vm1 = vcmp.lt.s32.totalorder %v1929_v40, 256 }
 0x480   : > { %v1712_v19 = vpop.xlane.xlu0 %1711 }
 0x481   : > { %v1840_v43 = vmul.f32 %v2521_v9, %v1712_v19  ;;  %v1931_v17 = vsub.s32 %v1928_v18, %v1930_v4 }
 0x482   : > { %v1714_v12 = vpop.xlane.xlu1 %1713 }
 0x483   : > { %1868 = vxpose.xlu0.b32.cont [10/16] (narrow) %v1814_v58, 8  ;;  %1892 = vxpose.xlu1.b32.cont [2/16] (narrow) %v1830_v11, 8  ;;  %v1842_v52 = vmul.f32 %v2525_v16, %v1714_v12 }
 0x484   : > { %v1708_v14 = vpop.xlane.xlu0 %1707 }
 0x485   : > { %v1836_v27 = vmul.f32 %v2513_v7, %v1708_v14 }
 0x486   : > { %v1710_v13 = vpop.xlane.xlu1 %1709 }
 0x487   : > { %1869 = vxpose.xlu0.b32.cont [11/16] (narrow) %v1816_v22, 8  ;;  %1893 = vxpose.xlu1.b32.cont [3/16] (narrow) %v1832_v25, 8  ;;  %v1838_v24 = vmul.f32 %v2517_v61, %v1710_v13 }
 0x488   : > { %v1720_v36 = vpop.xlane.xlu0 %1719 }
 0x489   : > { %v1848_v26 = vmul.f32 %v2531_v2, %v1720_v36 }
 0x48a   : > { %v1722_v39 = vpop.xlane.xlu1 %1721 }
 0x48b   : > { %1870 = vxpose.xlu0.b32.cont [12/16] (narrow) %v1818_v21, 8  ;;  %1894 = vxpose.xlu1.b32.cont [4/16] (narrow) %v1834_v48, 8  ;;  %v1850_v55 = vmul.f32 %v2533_v20, %v1722_v39 }
 0x48c   : > { %v1716_v29 = vpop.xlane.xlu0 %1715 }
 0x48d   : > { %v1844_v63 = vmul.f32 %v2527_v59, %v1716_v29 }
 0x48e   : > { %v1718_v45 = vpop.xlane.xlu1 %1717 }
 0x48f   : > { %1871 = vxpose.xlu0.b32.cont [13/16] (narrow) %v1820_v46, 8  ;;  %1895 = vxpose.xlu1.b32.cont [5/16] (narrow) %v1836_v27, 8  ;;  %v1846_v37 = vmul.f32 %v2529_v47, %v1718_v45 }
 0x490   : > { %v1728_v51 = vpop.xlane.xlu0 %1727 }
 0x491   : > { %v1856_v8 = vmul.f32 %v2539_v56, %v1728_v51 }
 0x492   : > { %v1730_v38 = vpop.xlane.xlu1 %1729 }
 0x493   : > { %1872 = vxpose.xlu0.b32.cont [14/16] (narrow) %v1822_v28, 8  ;;  %1896 = vxpose.xlu1.b32.cont [6/16] (narrow) %v1838_v24, 8  ;;  %v1858_v3 = vmul.f32 %v2541_v57, %v1730_v38 }
 0x494   : > { %v1724_v53 = vpop.xlane.xlu0 %1723 }
 0x495   : > { %v1852_v44 = vmul.f32 %v2535_v1, %v1724_v53 }
 0x496   : > { %v1726_v54 = vpop.xlane.xlu1 %1725 }
 0x497   : > { %1873 = vxpose.xlu0.b32.cont [15/16] (narrow) %v1824_v32, 8  ;;  %1897 = vxpose.xlu1.b32.cont [7/16] (narrow) %v1840_v43, 8  ;;  %v1854_v60 = vmul.f32 %v2537_v50, %v1726_v54 }
 0x49b   : > { %1874 = vxpose.xlu0.b32.end [16/16] (narrow) %v1826_v49, 8  ;;  %1898 = vxpose.xlu1.b32.cont [8/16] (narrow) %v1842_v52, 8 }
 0x49f   : > { %1899 = vxpose.xlu1.b32.cont [9/16] (narrow) %v1844_v63, 8 }
 0x4a3   : > { %1900 = vxpose.xlu1.b32.cont [10/16] (narrow) %v1846_v37, 8 }
 0x4a7   : > { %1901 = vxpose.xlu1.b32.cont [11/16] (narrow) %v1848_v26, 8 }
 0x4ab   : > { %1902 = vxpose.xlu1.b32.cont [12/16] (narrow) %v1850_v55, 8 }
 0x4af   : > { %1903 = vxpose.xlu1.b32.cont [13/16] (narrow) %v1852_v44, 8 }
 0x4b3   : > { %1904 = vxpose.xlu1.b32.cont [14/16] (narrow) %v1854_v60, 8 }
 0x4b7   : > { %1905 = vxpose.xlu1.b32.cont [15/16] (narrow) %v1856_v8, 8 }
 0x4bb   : > { %1906 = vxpose.xlu1.b32.end [16/16] (narrow) %v1858_v3, 8 }
 0x4df   : > { %v1875_v10 = vpop.trf.xlu0 }
 0x4ff   : > { %v1907_v33 = vpop.trf.xlu1 }
 0x500   : > { %v1925_v15 = vcombine.low %v1875_v10, %v1907_v33 }
 0x502   : > { %v1932_v0 = vrot.slane %v1925_v15, %v1931_v17 }
 0x504   : > { %v1939_v58 = vrot.slane %v1932_v0, %v1931_v17 }
 0x506   : > { %1945 = vst.msk [vmem:[%s350_s25] sm:$0x3] %vm1943_vm1, %v1939_v58 }
 0x507   : > { %2587 = shalt.err (!%p2584_p2)
}
 0x508   : > { %s2588_s29 = scalar_lea.hbm %s3441_s14, 32  ;;  %s2592_s25 = scalar_lea.hbm %s3494_s9, 64 }
 0x509   : > { %p2589_p4 = scmp.ne.s32.totalorder %s3441_s14, %s2588_s29  ;;  %p2593_p9 = scmp.lt.u32.totalorder %s3441_s14, %s3494_s9 }
 0x50a   : > { %p2594_p1 = scmp.lt.u32.totalorder %s2592_s25, %s2588_s29  ;;  %p2596_p6 = scmp.lt.u32.totalorder %s2588_s29, %s3441_s14 }
 0x50b   : > { %p2590_p5 = pnand %p2589_p4, %p3501_p11 }
 0x50c   : > { %p2595_p3 = por %p2594_p1, %p2593_p9 }
 0x50d   : > { %p2591_p7 = pneg %p2590_p5 }
 0x50e   : > { %p2597_p12 = por %p2596_p6, %p2595_p3 }
 0x510   : > { %p2598_p13 = pnand %p2597_p12, %p2591_p7 }
 0x512   : > { %2601 = shalt.err (!%p2598_p13)
}
 0x513   : > { %2353 = dma.vmem_to_hbm [thread:$0]  (%p3501_p11), %s3443_s23, 32, %s3441_s14, %s1947_s16  }
 0x514 PF: > { %s1973_s17 = sand.u32 1, %s2628_s30   ;;  %p3502_p8 = scmp.ne.s32.totalorder %s3499_s22, 0 }
 0x515   : > { %p3503_p10 = scmp.ge.s32.totalorder %s2640_s12, 2  ;;  %s1974_s13 = scalar_lea.sflag [#allocation4], %s1973_s17 }
 0x517   : > { %p2360_p0 = pnand %p3503_p10, %p3502_p8 }
 0x519   : > { %2623 = dma.done.wait (!%p2360_p0), %s1974_s13, 32  }
 0x51a   : > { %2625 = vsyncadd (!%p2360_p0), %s1974_s13, 4294967264  ;;  %p22_p2 = scmp.ge.s32.totalorder %s2722_s15, 4   ;;  %s3504_s30 = smov %s2632_s10 }
 0x51b   : > { %s3505_s10 = smov %s2636_s11  ;;  %s3506_s11 = smov %s2734_s18 }
 0x51c   : > { %s3507_s12 = smov %s2722_s15  ;;  %24 = sbr.rel (!%p22_p2) target bundleno = 5 (0x5), region = 101 }
 0x523   :  { %1979 = vsyncpa [#allocation3], 1 }
 0x524   :  { %1981 = vsyncpa [#allocation3 + $0x1], 1 }
 0x525   :  { %1982 = vsyncpa [#allocation4], 1 }
 0x526   :  { %1984 = vsyncpa [#allocation4 + $0x1], 1 }

</bundles_post_ra>
